<compile_context>
chip_gen: v7x
topology: tpu7x:2x2x1
jax: 0.10.0
libtpu: 0.0.40
codegen_flags: <defaults>
</compile_context>

<pallas_src>
import math

import jax
import jax.numpy as jnp
from jax.experimental import pallas as pl
from jax.experimental.pallas import tpu as pltpu

LANE = 128      # channels padded to one full lane group
MCHUNK = 256    # matmul M tile (rows) inside the kernel


def _round_up(x, m):
    return (x + m - 1) // m * m


def _cdiv(a, b):
    return -(-a // b)


def _pad_to(a, shape):
    pads = [(0, t - s) for s, t in zip(a.shape, shape)]
    return jnp.pad(a, pads)


# -----------------------------------------------------------------------------
# Fused whole-network kernel
# -----------------------------------------------------------------------------
def _make_tcn_kernel(plan, *, K, C, in_dim, B_TILE, LS, PAD8, has_ds, has_out,
                     d_real, ln_eps, mm_dtype):
    """plan: per-block static dims {dilation, pad, L_in, L1, L2}.
       Flat VMEM layout: sequence b occupies rows [b*LS, b*LS + L_valid); rows
       between/after sequences and the PAD8 lead rows of the conv-input buffers
       are kept at exactly zero (they implement the conv zero padding and the
       zero right-pad of the residual)."""
    f32 = jnp.float32
    N = B_TILE * LS
    L0 = plan[0]["L_in"]
    L_final = plan[-1]["L2"]

    def kernel(*refs):
        it = iter(refs)
        x_ref = next(it)                 # (B_TILE, L0, in_dim)
        w_ref = next(it)                 # (n_convs, K, C, C)  mm_dtype, BN scale folded
        sh_ref = next(it)                # (n_convs, 1, C)     f32 folded shift
        wd_ref = bd_ref = wo_ref = bo_ref = None
        if has_ds:
            wd_ref = next(it)            # (C, C) mm_dtype
            bd_ref = next(it)            # (1, C) f32
        if has_out:
            wo_ref = next(it)            # (C, C) mm_dtype
            bo_ref = next(it)            # (1, C) f32
        g_ref = next(it)                 # (1, C) LN gamma (zero padded)
        b_ref = next(it)                 # (1, C) LN beta
        o_ref = next(it)                 # (B_TILE, L_final, C)
        abuf = next(it)                  # (N, C) f32        block activations / residual
        xin = next(it)                   # (PAD8+N, C) mm    conv input (zero lead/tails)
        xmid = next(it)                  # (PAD8+N, C) mm    conv1 output

        # ---- establish the zero invariants once per grid step ----
        abuf[...] = jnp.zeros_like(abuf)
        xin[...] = jnp.zeros_like(xin)
        xmid[...] = jnp.zeros_like(xmid)

        # ---- load input; channel pad to C happens here (lanes [in_dim, C) stay 0) ----
        for b in range(B_TILE):
            r0 = b * LS
            abuf[r0:r0 + L0, 0:in_dim] = x_ref[b].astype(f32)
            xin[PAD8 + r0:PAD8 + r0 + L0, :] = abuf[r0:r0 + L0, :].astype(mm_dtype)

        def conv_sweep(ci, src, pad, dil, n_rows, epilogue):
            """Output-stationary dilated conv over the flat batch slab:
            for each output-row chunk accumulate K shifted matmuls (shifted reads
            of `src`; zero rows supply the padding), then hand the f32 chunk to
            `epilogue(m0, m1, acc)`."""
            ws = [w_ref[ci, j] for j in range(K)]      # resident (C, C) weights
            for m0 in range(0, n_rows, MCHUNK):
                m1 = min(m0 + MCHUNK, n_rows)
                acc = None
                for j in range(K):
                    off = pad - j * dil                # >= 0
                    part = jnp.dot(src[PAD8 + m0 - off:PAD8 + m1 - off, :], ws[j],
                                   preferred_element_type=f32)
                    acc = part if acc is None else acc + part
                epilogue(m0, m1, acc)

        for i, blk in enumerate(plan):
            dil, pad = blk["dilation"], blk["pad"]
            L_in, L1, L2 = blk["L_in"], blk["L1"], blk["L2"]

            # residual prep: 1x1 downsample on block 0 when in_ch != out_ch
            if i == 0 and has_ds:
                wd = wd_ref[...]
                bd = bd_ref[...]
                for b in range(B_TILE):
                    r0 = b * LS
                    for m0 in range(0, L_in, MCHUNK):
                        m1 = min(m0 + MCHUNK, L_in)
                        abuf[r0 + m0:r0 + m1, :] = (
                            jnp.dot(xin[PAD8 + r0 + m0:PAD8 + r0 + m1, :], wd,
                                    preferred_element_type=f32) + bd)

            # ---- conv1 (BN scale folded) + shift + ReLU -> xmid ----
            sh1 = sh_ref[2 * i]

            def ep1(m0, m1, acc, _sh=sh1):
                xmid[PAD8 + m0:PAD8 + m1, :] = jnp.maximum(acc + _sh, 0.0).astype(mm_dtype)

            conv_sweep(2 * i, xin, pad, dil, (B_TILE - 1) * LS + L1, ep1)
            # keep zero-tail invariant for the interior sequences
            for b in range(B_TILE - 1):
                r0 = b * LS
                if L1 < LS:
                    xmid[PAD8 + r0 + L1:PAD8 + r0 + LS, :] = jnp.zeros(
                        (LS - L1, C), mm_dtype)

            # ---- conv2 + shift + residual add + ReLU -> abuf (f32) & xin (mm) ----
            sh2 = sh_ref[2 * i + 1]

            def ep2(m0, m1, acc, _sh=sh2):
                # abuf rows >= L_in per sequence are zero => residual is implicitly
                # right-padded with zeros, exactly like F.pad in the reference.
                out = jnp.maximum(acc + _sh + abuf[m0:m1, :], 0.0)
                abuf[m0:m1, :] = out
                xin[PAD8 + m0:PAD8 + m1, :] = out.astype(mm_dtype)

            conv_sweep(2 * i + 1, xmid, pad, dil, (B_TILE - 1) * LS + L2, ep2)
            for b in range(B_TILE - 1):
                r0 = b * LS
                if L2 < LS:
                    abuf[r0 + L2:r0 + LS, :] = jnp.zeros((LS - L2, C), f32)
                    xin[PAD8 + r0 + L2:PAD8 + r0 + LS, :] = jnp.zeros(
                        (LS - L2, C), mm_dtype)

        # ---- optional 1x1 output conv + LayerNorm (masked over d_real channels) ----
        lane = jax.lax.broadcasted_iota(jnp.int32, (1, C), 1)
        mask = lane < d_real
        inv_d = 1.0 / float(d_real)
        gam = g_ref[...]
        bet = b_ref[...]
        if has_out:
            wo = wo_ref[...]
            bo = bo_ref[...]
        for b in range(B_TILE):
            r0 = b * LS
            for m0 in range(0, L_final, MCHUNK):
                m1 = min(m0 + MCHUNK, L_final)
                xv = abuf[r0 + m0:r0 + m1, :]
                if has_out:
                    xv = jnp.dot(xv.astype(mm_dtype), wo,
                                 preferred_element_type=f32) + bo
                mean = jnp.sum(jnp.where(mask, xv, 0.0), axis=-1,
                               keepdims=True) * inv_d
                diff = xv - mean
                dm = jnp.where(mask, diff, 0.0)
                var = jnp.sum(dm * dm, axis=-1, keepdims=True) * inv_d
                y = diff * jax.lax.rsqrt(var + ln_eps) * gam + bet
                o_ref[b, m0:m1, :] = y.astype(o_ref.dtype)

    return kernel


# -----------------------------------------------------------------------------
# Wrapper: parameter packing + single pallas_call
# -----------------------------------------------------------------------------
def tcn_forward(params, x, kernel_size=3, bn_eps=1e-5, ln_eps=1e-5,
                mm_dtype=jnp.bfloat16):
    """x: [B, L, input_dim]  ->  [B, L + sum(2*(K-1)*dil), output_dim]"""
    x = jnp.asarray(x, jnp.float32)
    B, L0, in_dim = x.shape
    blocks = params["blocks"]
    hidden = blocks[0]["w1"].shape[-1]
    out_dim = params["output_dim"]
    K = kernel_size
    C = _round_up(max(in_dim, hidden, out_dim), LANE)

    # ---- static length plan (each conv grows L by (K-1)*dilation) ----
    plan, L = [], L0
    for blk in blocks:
        d = blk["dilation"]
        pad = (K - 1) * d
        plan.append(dict(dilation=d, pad=pad, L_in=L, L1=L + pad, L2=L + 2 * pad))
        L = L + 2 * pad
    L_final = L
    PADMAX = max(p["pad"] for p in plan)
    PAD8 = _round_up(max(PADMAX, 1), 8)
    LS = _round_up(L_final, 8)     # per-sequence row stride in the flat VMEM layout

    # batch tile: fold sequences into the matmul M dim; keep >= 2 grid steps (v7x)
    bt = max(1, min(B, _cdiv(256, LS)))
    if B >= 2:
        bt = min(bt, _cdiv(B, 2))
    B_pad = _round_up(B, bt)
    if B_pad != B:
        x = jnp.pad(x, ((0, B_pad - B), (0, 0), (0, 0)))
    grid = (B_pad // bt,)
    N = bt * LS

    # ---- pack params: BN scale folded into conv weights, shift kept in f32 ----
    Ws, SHs = [], []
    for blk in blocks:
        for (w, b, g, bta, m, v) in [
            (blk["w1"], blk["b1"], blk["bn1_gamma"], blk["bn1_beta"],
             blk["bn1_mean"], blk["bn1_var"]),
            (blk["w2"], blk["b2"], blk["bn2_gamma"], blk["bn2_beta"],
             blk["bn2_mean"], blk["bn2_var"]),
        ]:
            s = g / jnp.sqrt(v + bn_eps)
            Ws.append(_pad_to(w * s[None, None, :], (K, C, C)).astype(mm_dtype))
            SHs.append(_pad_to((b - m) * s + bta, (C,)).reshape(1, C))
    W = jnp.stack(Ws)      # (n_convs, K, C, C)
    SH = jnp.stack(SHs)    # (n_convs, 1, C)

    has_ds = "w_ds" in blocks[0]
    has_out = "w_out" in params

    def full_spec(a):
        nd = a.ndim
        return pl.BlockSpec(a.shape, lambda g_, _nd=nd: (0,) * _nd)

    args = [x, W, SH]
    in_specs = [pl.BlockSpec((bt, L0, in_dim), lambda g_: (g_, 0, 0)),
                full_spec(W), full_spec(SH)]
    if has_ds:
        wd = _pad_to(blocks[0]["w_ds"][0], (C, C)).astype(mm_dtype)
        bd = _pad_to(blocks[0]["b_ds"], (C,)).reshape(1, C)
        args += [wd, bd]
        in_specs += [full_spec(wd), full_spec(bd)]
    if has_out:
        wo = _pad_to(params["w_out"][0], (C, C)).astype(mm_dtype)
        bo = _pad_to(params["b_out"], (C,)).reshape(1, C)
        args += [wo, bo]
        in_specs += [full_spec(wo), full_spec(bo)]
    gam = _pad_to(params["ln_gamma"], (C,)).reshape(1, C)
    bet = _pad_to(params["ln_beta"], (C,)).reshape(1, C)
    args += [gam, bet]
    in_specs += [full_spec(gam), full_spec(bet)]

    kernel = _make_tcn_kernel(plan, K=K, C=C, in_dim=in_dim, B_TILE=bt, LS=LS,
                              PAD8=PAD8, has_ds=has_ds, has_out=has_out,
                              d_real=out_dim, ln_eps=ln_eps, mm_dtype=mm_dtype)

    itemsize = jnp.dtype(mm_dtype).itemsize
    scratch = [pltpu.VMEM((N, C), jnp.float32),
               pltpu.VMEM((PAD8 + N, C), mm_dtype),
               pltpu.VMEM((PAD8 + N, C), mm_dtype)]

    # advisory cost estimate
    flops = 2 * C * C * K * B_pad * sum(p["L1"] + p["L2"] for p in plan)
    if has_ds:
        flops += 2 * C * C * B_pad * plan[0]["L_in"]
    if has_out:
        flops += 2 * C * C * B_pad * L_final
    bytes_accessed = (x.size * 4 + B_pad * L_final * C * 4 +
                      W.size * itemsize + SH.size * 4 + 6 * C * 4)
    # explicit VMEM budget only when the working set outgrows the default scoped
    # limit (v5e: 16 MiB) -- at small shapes leave the compiler's default alone.
    need = (N * C * 4 + 2 * (PAD8 + N) * C * itemsize
            + 2 * bt * L0 * in_dim * 4 + 2 * bt * L_final * C * 4
            + W.size * itemsize + SH.size * 4 + 6 * C * 4)
    vmem_limit = None if need <= (24 << 20) else int(min(need + (8 << 20), 112 << 20))

    out = pl.pallas_call(
        kernel,
        out_shape=jax.ShapeDtypeStruct((B_pad, L_final, C), x.dtype),
        grid=grid,
        in_specs=in_specs,
        out_specs=pl.BlockSpec((bt, L_final, C), lambda g_: (g_, 0, 0)),
        scratch_shapes=scratch,
        compiler_params=pltpu.CompilerParams(
            dimension_semantics=("parallel",),
            vmem_limit_bytes=vmem_limit),
        cost_estimate=pl.CostEstimate(flops=int(flops),
                                      transcendentals=int(B_pad * L_final),
                                      bytes_accessed=int(bytes_accessed)),
    )(*args)
    return out[:B, :, :out_dim]


# -----------------------------------------------------------------------------
# Parameter init (deterministic, Kaiming-normal fan_out like the PyTorch module)
# -----------------------------------------------------------------------------
def init_tcn_params(key, input_dim, hidden_dim, output_dim=None, num_layers=3,
                    kernel_size=3, dilation_base=2):
    if output_dim is None:
        output_dim = hidden_dim
    params = {"blocks": [], "output_dim": output_dim}
    for i in range(num_layers):
        dilation = dilation_base ** i
        in_ch = input_dim if i == 0 else hidden_dim
        out_ch = hidden_dim
        key, k1, k2, k3 = jax.random.split(key, 4)
        std = math.sqrt(2.0 / (out_ch * kernel_size))  # kaiming_normal_ fan_out relu
        blk = {
            "dilation": dilation,
            "padding": (kernel_size - 1) * dilation,
            "w1": jax.random.normal(k1, (kernel_size, in_ch, out_ch), jnp.float32) * std,
            "b1": jnp.zeros((out_ch,), jnp.float32),
            "w2": jax.random.normal(k2, (kernel_size, out_ch, out_ch), jnp.float32) * std,
            "b2": jnp.zeros((out_ch,), jnp.float32),
            # BatchNorm1d parameters / running stats (eval mode)
            "bn1_gamma": jnp.ones((out_ch,), jnp.float32),
            "bn1_beta": jnp.zeros((out_ch,), jnp.float32),
            "bn1_mean": jnp.zeros((out_ch,), jnp.float32),
            "bn1_var": jnp.ones((out_ch,), jnp.float32),
            "bn2_gamma": jnp.ones((out_ch,), jnp.float32),
            "bn2_beta": jnp.zeros((out_ch,), jnp.float32),
            "bn2_mean": jnp.zeros((out_ch,), jnp.float32),
            "bn2_var": jnp.ones((out_ch,), jnp.float32),
        }
        if in_ch != out_ch:  # 1x1 downsample conv on the residual path
            std_ds = math.sqrt(2.0 / out_ch)
            blk["w_ds"] = jax.random.normal(k3, (1, in_ch, out_ch), jnp.float32) * std_ds
            blk["b_ds"] = jnp.zeros((out_ch,), jnp.float32)
        params["blocks"].append(blk)
    if hidden_dim != output_dim:  # output_layer = Conv1d(hidden, output, 1)
        key, ko = jax.random.split(key)
        std_o = math.sqrt(2.0 / output_dim)
        params["w_out"] = jax.random.normal(ko, (1, hidden_dim, output_dim),
                                            jnp.float32) * std_o
        params["b_out"] = jnp.zeros((output_dim,), jnp.float32)
    params["ln_gamma"] = jnp.ones((output_dim,), jnp.float32)
    params["ln_beta"] = jnp.zeros((output_dim,), jnp.float32)
    return params


# -----------------------------------------------------------------------------
# Pure-JAX reference (mirrors the PyTorch module in eval mode) for validation
# -----------------------------------------------------------------------------
def _tcn_reference(params, x, kernel_size=3, bn_eps=1e-5, ln_eps=1e-5):
    def conv1d(x_ncl, w_kio, b, dilation, padding):
        w_oik = jnp.transpose(w_kio, (2, 1, 0))  # [C_out, C_in, K]
        y = jax.lax.conv_general_dilated(
            x_ncl, w_oik, window_strides=(1,), padding=[(padding, padding)],
            rhs_dilation=(dilation,), dimension_numbers=("NCH", "OIH", "NCH"))
        return y + b[None, :, None]

    def bn(o, g, bt, m, v):
        return (o - m[None, :, None]) / jnp.sqrt(v[None, :, None] + bn_eps) \
            * g[None, :, None] + bt[None, :, None]

    h = jnp.transpose(x, (0, 2, 1))  # [B, C, L]
    for blk in params["blocks"]:
        d, pad = blk["dilation"], blk["padding"]
        res = h
        o = jnp.maximum(bn(conv1d(h, blk["w1"], blk["b1"], d, pad),
                           blk["bn1_gamma"], blk["bn1_beta"],
                           blk["bn1_mean"], blk["bn1_var"]), 0.0)
        o = bn(conv1d(o, blk["w2"], blk["b2"], d, pad),
               blk["bn2_gamma"], blk["bn2_beta"], blk["bn2_mean"], blk["bn2_var"])
        if "w_ds" in blk:
            res = conv1d(res, blk["w_ds"], blk["b_ds"], 1, 0)
        diff = o.shape[-1] - res.shape[-1]
        if diff > 0:
            res = jnp.pad(res, ((0, 0), (0, 0), (0, diff)))
        elif diff < 0:
            res = res[:, :, :o.shape[-1]]
        h = jnp.maximum(o + res, 0.0)
    if "w_out" in params:
        h = conv1d(h, params["w_out"], params["b_out"], 1, 0)
    h = jnp.transpose(h, (0, 2, 1))
    mean = jnp.mean(h, axis=-1, keepdims=True)
    var = jnp.mean((h - mean) ** 2, axis=-1, keepdims=True)
    return (h - mean) * jax.lax.rsqrt(var + ln_eps) * params["ln_gamma"] + params["ln_beta"]


# -----------------------------------------------------------------------------
if __name__ == "__main__":
    key = jax.random.PRNGKey(0)
    kx, kp, kx2, kp2 = jax.random.split(key, 4)

    # ---- Config A: downsample path (input_dim != hidden), output_dim == hidden ----
    B, L, input_dim, hidden_dim = 2, 8, 8, 16
    x = jax.random.normal(kx, (B, L, input_dim), jnp.float32)
    params = init_tcn_params(kp, input_dim, hidden_dim, num_layers=3,
                             kernel_size=3, dilation_base=2)

    out = jax.block_until_ready(tcn_forward(params, x))          # bf16 MXU operands
    # each block grows L by 2*(k-1)*dilation: 8 -> 12 -> 20 -> 36
    assert out.shape == (B, 36, hidden_dim), out.shape
    assert bool(jnp.all(jnp.isfinite(out)))
    ref = _tcn_reference(params, x)
    err_bf16 = float(jnp.max(jnp.abs(out - ref)))
    assert err_bf16 < 2.5e-1, err_bf16

    out32 = jax.block_until_ready(tcn_forward(params, x, mm_dtype=jnp.float32))
    err_f32 = float(jnp.max(jnp.abs(out32 - ref)))
    assert err_f32 < 2e-2, err_f32

    # ---- Config B: no downsample, 1x1 output conv, odd batch (batch tiling path) ----
    B2, Lq, in2, hid2, od2 = 3, 8, 16, 16, 24
    x2 = jax.random.normal(kx2, (B2, Lq, in2), jnp.float32)
    params2 = init_tcn_params(kp2, in2, hid2, output_dim=od2, num_layers=3,
                              kernel_size=3, dilation_base=2)
    o2 = jax.block_until_ready(tcn_forward(params2, x2))
    assert o2.shape == (B2, 36, od2), o2.shape
    ref2 = _tcn_reference(params2, x2)
    err2 = float(jnp.max(jnp.abs(o2 - ref2)))
    assert err2 < 2.5e-1, err2

    print("KERNEL_OK")
</pallas_src>

<mosaic_0001>
module attributes {stable_mosaic.version = 11 : i64} {
  func.func @kernel(%arg0: i32, %arg1: memref<1x8x8xf32, #tpu.memory_space<vmem>>, %arg2: memref<6x3x128x128xbf16, #tpu.memory_space<vmem>>, %arg3: memref<6x1x128xf32, #tpu.memory_space<vmem>>, %arg4: memref<128x128xbf16, #tpu.memory_space<vmem>>, %arg5: memref<1x128xf32, #tpu.memory_space<vmem>>, %arg6: memref<1x128xf32, #tpu.memory_space<vmem>>, %arg7: memref<1x128xf32, #tpu.memory_space<vmem>>, %arg8: memref<1x36x128xf32, #tpu.memory_space<vmem>>, %arg9: memref<40x128xf32, #tpu.memory_space<vmem>>, %arg10: memref<48x128xbf16, #tpu.memory_space<vmem>>, %arg11: memref<48x128xbf16, #tpu.memory_space<vmem>>) attributes {dimension_semantics = [#tpu.dimension_semantics<parallel>], iteration_bounds = array<i64: 2>, scalar_prefetch = 0 : i64, scratch_operands = 3 : i64, tpu.core_type = #tpu.core_type<tc>, window_params = [{transform_indices = @transform_0, window_bounds = array<i64: 1, 8, 8>}, {pipeline_mode = #tpu.pipeline_mode<synchronous>, transform_indices = @transform_1, window_bounds = array<i64: 6, 3, 128, 128>}, {pipeline_mode = #tpu.pipeline_mode<synchronous>, transform_indices = @transform_2, window_bounds = array<i64: 6, 1, 128>}, {pipeline_mode = #tpu.pipeline_mode<synchronous>, transform_indices = @transform_3, window_bounds = array<i64: 128, 128>}, {pipeline_mode = #tpu.pipeline_mode<synchronous>, transform_indices = @transform_4, window_bounds = array<i64: 1, 128>}, {pipeline_mode = #tpu.pipeline_mode<synchronous>, transform_indices = @transform_5, window_bounds = array<i64: 1, 128>}, {pipeline_mode = #tpu.pipeline_mode<synchronous>, transform_indices = @transform_6, window_bounds = array<i64: 1, 128>}, {transform_indices = @transform_7, window_bounds = array<i64: 1, 36, 128>}]} {
    %cst = arith.constant 0.000000e+00 : f32
    %0 = vector.broadcast %cst : f32 to vector<40x128xf32>
    %c0 = arith.constant 0 : index
    %c0_0 = arith.constant 0 : index
    %1 = vector.load %arg9[%c0, %c0_0] : memref<40x128xf32, #tpu.memory_space<vmem>>, vector<40x128xf32>
    tpu.vector_store %arg9[%c0, %c0_0], %0 {strides = array<i32>} : memref<40x128xf32, #tpu.memory_space<vmem>>, vector<40x128xf32>,
    %cst_1 = arith.constant 0.000000e+00 : bf16
    %2 = vector.broadcast %cst_1 : bf16 to vector<48x128xbf16>
    %c0_2 = arith.constant 0 : index
    %c0_3 = arith.constant 0 : index
    %3 = vector.load %arg10[%c0_2, %c0_3] : memref<48x128xbf16, #tpu.memory_space<vmem>>, vector<48x128xbf16>
    tpu.vector_store %arg10[%c0_2, %c0_3], %2 {strides = array<i32>} : memref<48x128xbf16, #tpu.memory_space<vmem>>, vector<48x128xbf16>,
    %cst_4 = arith.constant 0.000000e+00 : bf16
    %4 = vector.broadcast %cst_4 : bf16 to vector<48x128xbf16>
    %c0_5 = arith.constant 0 : index
    %c0_6 = arith.constant 0 : index
    %5 = vector.load %arg11[%c0_5, %c0_6] : memref<48x128xbf16, #tpu.memory_space<vmem>>, vector<48x128xbf16>
    tpu.vector_store %arg11[%c0_5, %c0_6], %4 {strides = array<i32>} : memref<48x128xbf16, #tpu.memory_space<vmem>>, vector<48x128xbf16>,
    %c0_7 = arith.constant 0 : index
    %c0_8 = arith.constant 0 : index
    %c0_9 = arith.constant 0 : index
    %6 = vector.load %arg1[%c0_7, %c0_8, %c0_9] : memref<1x8x8xf32, #tpu.memory_space<vmem>>, vector<1x8x8xf32>
    %7 = vector.shape_cast %6 : vector<1x8x8xf32> to vector<8x8xf32>
    %c0_10 = arith.constant 0 : index
    %c0_11 = arith.constant 0 : index
    %8 = vector.load %arg9[%c0_10, %c0_11] : memref<40x128xf32, #tpu.memory_space<vmem>>, vector<8x8xf32>
    tpu.vector_store %arg9[%c0_10, %c0_11], %7 {strides = array<i32>} : memref<40x128xf32, #tpu.memory_space<vmem>>, vector<8x8xf32>,
    %c0_12 = arith.constant 0 : index
    %c0_13 = arith.constant 0 : index
    %9 = vector.load %arg9[%c0_12, %c0_13] : memref<40x128xf32, #tpu.memory_space<vmem>>, vector<8x128xf32>
    %10 = arith.truncf %9 : vector<8x128xf32> to vector<8x128xbf16>
    %c8 = arith.constant 8 : index
    %c0_14 = arith.constant 0 : index
    %11 = vector.load %arg10[%c8, %c0_14] : memref<48x128xbf16, #tpu.memory_space<vmem>>, vector<8x128xbf16>
    tpu.vector_store %arg10[%c8, %c0_14], %10 {strides = array<i32>} : memref<48x128xbf16, #tpu.memory_space<vmem>>, vector<8x128xbf16>,
    %c0_15 = arith.constant 0 : index
    %c0_16 = arith.constant 0 : index
    %12 = vector.load %arg4[%c0_15, %c0_16] : memref<128x128xbf16, #tpu.memory_space<vmem>>, vector<128x128xbf16>
    %c0_17 = arith.constant 0 : index
    %c0_18 = arith.constant 0 : index
    %13 = vector.load %arg5[%c0_17, %c0_18] : memref<1x128xf32, #tpu.memory_space<vmem>>, vector<1x128xf32>
    %c8_19 = arith.constant 8 : index
    %c0_20 = arith.constant 0 : index
    %14 = vector.load %arg10[%c8_19, %c0_20] : memref<48x128xbf16, #tpu.memory_space<vmem>>, vector<8x128xbf16>
    %cst_21 = arith.constant dense<0.000000e+00> : vector<8x128xf32>
    %15 = tpu.matmul %14, %12, %cst_21 {dimension_numbers = #tpu.dot_dimension_numbers<[1], [0], [0], [1], [0, 0, 1, 1], [], []>} : vector<8x128xbf16>, vector<128x128xbf16>, vector<8x128xf32> -> vector<8x128xf32>
    %16 = vector.broadcast %13 : vector<1x128xf32> to vector<8x128xf32>
    %17 = arith.addf %15, %16 : vector<8x128xf32>
    %c0_22 = arith.constant 0 : index
    %c0_23 = arith.constant 0 : index
    %18 = vector.load %arg9[%c0_22, %c0_23] : memref<40x128xf32, #tpu.memory_space<vmem>>, vector<8x128xf32>
    tpu.vector_store %arg9[%c0_22, %c0_23], %17 {strides = array<i32>} : memref<40x128xf32, #tpu.memory_space<vmem>>, vector<8x128xf32>,
    %c0_24 = arith.constant 0 : index
    %c0_25 = arith.constant 0 : index
    %c0_26 = arith.constant 0 : index
    %19 = vector.load %arg3[%c0_24, %c0_25, %c0_26] : memref<6x1x128xf32, #tpu.memory_space<vmem>>, vector<1x1x128xf32>
    %20 = vector.shape_cast %19 : vector<1x1x128xf32> to vector<1x128xf32>
    %c0_27 = arith.constant 0 : index
    %c0_28 = arith.constant 0 : index
    %c0_29 = arith.constant 0 : index
    %c0_30 = arith.constant 0 : index
    %21 = vector.load %arg2[%c0_27, %c0_28, %c0_29, %c0_30] : memref<6x3x128x128xbf16, #tpu.memory_space<vmem>>, vector<1x1x128x128xbf16>
    %22 = vector.shape_cast %21 : vector<1x1x128x128xbf16> to vector<128x128xbf16>
    %c0_31 = arith.constant 0 : index
    %c1 = arith.constant 1 : index
    %c0_32 = arith.constant 0 : index
    %c0_33 = arith.constant 0 : index
    %23 = vector.load %arg2[%c0_31, %c1, %c0_32, %c0_33] : memref<6x3x128x128xbf16, #tpu.memory_space<vmem>>, vector<1x1x128x128xbf16>
    %24 = vector.shape_cast %23 : vector<1x1x128x128xbf16> to vector<128x128xbf16>
    %c0_34 = arith.constant 0 : index
    %c2 = arith.constant 2 : index
    %c0_35 = arith.constant 0 : index
    %c0_36 = arith.constant 0 : index
    %25 = vector.load %arg2[%c0_34, %c2, %c0_35, %c0_36] : memref<6x3x128x128xbf16, #tpu.memory_space<vmem>>, vector<1x1x128x128xbf16>
    %26 = vector.shape_cast %25 : vector<1x1x128x128xbf16> to vector<128x128xbf16>
    %c6 = arith.constant 6 : index
    %c0_37 = arith.constant 0 : index
    %27 = vector.load %arg10[%c6, %c0_37] : memref<48x128xbf16, #tpu.memory_space<vmem>>, vector<10x128xbf16>
    %cst_38 = arith.constant dense<0.000000e+00> : vector<10x128xf32>
    %28 = tpu.matmul %27, %22, %cst_38 {dimension_numbers = #tpu.dot_dimension_numbers<[1], [0], [0], [1], [0, 0, 1, 1], [], []>} : vector<10x128xbf16>, vector<128x128xbf16>, vector<10x128xf32> -> vector<10x128xf32>
    %c7 = arith.constant 7 : index
    %c0_39 = arith.constant 0 : index
    %29 = vector.load %arg10[%c7, %c0_39] : memref<48x128xbf16, #tpu.memory_space<vmem>>, vector<10x128xbf16>
    %cst_40 = arith.constant dense<0.000000e+00> : vector<10x128xf32>
    %30 = tpu.matmul %29, %24, %cst_40 {dimension_numbers = #tpu.dot_dimension_numbers<[1], [0], [0], [1], [0, 0, 1, 1], [], []>} : vector<10x128xbf16>, vector<128x128xbf16>, vector<10x128xf32> -> vector<10x128xf32>
    %31 = arith.addf %28, %30 : vector<10x128xf32>
    %c8_41 = arith.constant 8 : index
    %c0_42 = arith.constant 0 : index
    %32 = vector.load %arg10[%c8_41, %c0_42] : memref<48x128xbf16, #tpu.memory_space<vmem>>, vector<10x128xbf16>
    %cst_43 = arith.constant dense<0.000000e+00> : vector<10x128xf32>
    %33 = tpu.matmul %32, %26, %cst_43 {dimension_numbers = #tpu.dot_dimension_numbers<[1], [0], [0], [1], [0, 0, 1, 1], [], []>} : vector<10x128xbf16>, vector<128x128xbf16>, vector<10x128xf32> -> vector<10x128xf32>
    %34 = arith.addf %31, %33 : vector<10x128xf32>
    %35 = vector.broadcast %20 : vector<1x128xf32> to vector<10x128xf32>
    %36 = arith.addf %34, %35 : vector<10x128xf32>
    %cst_44 = arith.constant 0.000000e+00 : f32
    %37 = vector.broadcast %cst_44 : f32 to vector<10x128xf32>
    %38 = arith.maximumf %36, %37 : vector<10x128xf32>
    %39 = arith.truncf %38 : vector<10x128xf32> to vector<10x128xbf16>
    %c8_45 = arith.constant 8 : index
    %c0_46 = arith.constant 0 : index
    %40 = vector.load %arg11[%c8_45, %c0_46] : memref<48x128xbf16, #tpu.memory_space<vmem>>, vector<10x128xbf16>
    tpu.vector_store %arg11[%c8_45, %c0_46], %39 {strides = array<i32>} : memref<48x128xbf16, #tpu.memory_space<vmem>>, vector<10x128xbf16>,
    %c1_47 = arith.constant 1 : index
    %c0_48 = arith.constant 0 : index
    %c0_49 = arith.constant 0 : index
    %41 = vector.load %arg3[%c1_47, %c0_48, %c0_49] : memref<6x1x128xf32, #tpu.memory_space<vmem>>, vector<1x1x128xf32>
    %42 = vector.shape_cast %41 : vector<1x1x128xf32> to vector<1x128xf32>
    %c1_50 = arith.constant 1 : index
    %c0_51 = arith.constant 0 : index
    %c0_52 = arith.constant 0 : index
    %c0_53 = arith.constant 0 : index
    %43 = vector.load %arg2[%c1_50, %c0_51, %c0_52, %c0_53] : memref<6x3x128x128xbf16, #tpu.memory_space<vmem>>, vector<1x1x128x128xbf16>
    %44 = vector.shape_cast %43 : vector<1x1x128x128xbf16> to vector<128x128xbf16>
    %c1_54 = arith.constant 1 : index
    %c1_55 = arith.constant 1 : index
    %c0_56 = arith.constant 0 : index
    %c0_57 = arith.constant 0 : index
    %45 = vector.load %arg2[%c1_54, %c1_55, %c0_56, %c0_57] : memref<6x3x128x128xbf16, #tpu.memory_space<vmem>>, vector<1x1x128x128xbf16>
    %46 = vector.shape_cast %45 : vector<1x1x128x128xbf16> to vector<128x128xbf16>
    %c1_58 = arith.constant 1 : index
    %c2_59 = arith.constant 2 : index
    %c0_60 = arith.constant 0 : index
    %c0_61 = arith.constant 0 : index
    %47 = vector.load %arg2[%c1_58, %c2_59, %c0_60, %c0_61] : memref<6x3x128x128xbf16, #tpu.memory_space<vmem>>, vector<1x1x128x128xbf16>
    %48 = vector.shape_cast %47 : vector<1x1x128x128xbf16> to vector<128x128xbf16>
    %c6_62 = arith.constant 6 : index
    %c0_63 = arith.constant 0 : index
    %49 = vector.load %arg11[%c6_62, %c0_63] : memref<48x128xbf16, #tpu.memory_space<vmem>>, vector<12x128xbf16>
    %cst_64 = arith.constant dense<0.000000e+00> : vector<12x128xf32>
    %50 = tpu.matmul %49, %44, %cst_64 {dimension_numbers = #tpu.dot_dimension_numbers<[1], [0], [0], [1], [0, 0, 1, 1], [], []>} : vector<12x128xbf16>, vector<128x128xbf16>, vector<12x128xf32> -> vector<12x128xf32>
    %c7_65 = arith.constant 7 : index
    %c0_66 = arith.constant 0 : index
    %51 = vector.load %arg11[%c7_65, %c0_66] : memref<48x128xbf16, #tpu.memory_space<vmem>>, vector<12x128xbf16>
    %cst_67 = arith.constant dense<0.000000e+00> : vector<12x128xf32>
    %52 = tpu.matmul %51, %46, %cst_67 {dimension_numbers = #tpu.dot_dimension_numbers<[1], [0], [0], [1], [0, 0, 1, 1], [], []>} : vector<12x128xbf16>, vector<128x128xbf16>, vector<12x128xf32> -> vector<12x128xf32>
    %53 = arith.addf %50, %52 : vector<12x128xf32>
    %c8_68 = arith.constant 8 : index
    %c0_69 = arith.constant 0 : index
    %54 = vector.load %arg11[%c8_68, %c0_69] : memref<48x128xbf16, #tpu.memory_space<vmem>>, vector<12x128xbf16>
    %cst_70 = arith.constant dense<0.000000e+00> : vector<12x128xf32>
    %55 = tpu.matmul %54, %48, %cst_70 {dimension_numbers = #tpu.dot_dimension_numbers<[1], [0], [0], [1], [0, 0, 1, 1], [], []>} : vector<12x128xbf16>, vector<128x128xbf16>, vector<12x128xf32> -> vector<12x128xf32>
    %56 = arith.addf %53, %55 : vector<12x128xf32>
    %57 = vector.broadcast %42 : vector<1x128xf32> to vector<12x128xf32>
    %58 = arith.addf %56, %57 : vector<12x128xf32>
    %c0_71 = arith.constant 0 : index
    %c0_72 = arith.constant 0 : index
    %59 = vector.load %arg9[%c0_71, %c0_72] : memref<40x128xf32, #tpu.memory_space<vmem>>, vector<12x128xf32>
    %60 = arith.addf %58, %59 : vector<12x128xf32>
    %cst_73 = arith.constant 0.000000e+00 : f32
    %61 = vector.broadcast %cst_73 : f32 to vector<12x128xf32>
    %62 = arith.maximumf %60, %61 : vector<12x128xf32>
    %c0_74 = arith.constant 0 : index
    %c0_75 = arith.constant 0 : index
    %63 = vector.load %arg9[%c0_74, %c0_75] : memref<40x128xf32, #tpu.memory_space<vmem>>, vector<12x128xf32>
    tpu.vector_store %arg9[%c0_74, %c0_75], %62 {strides = array<i32>} : memref<40x128xf32, #tpu.memory_space<vmem>>, vector<12x128xf32>,
    %64 = arith.truncf %62 : vector<12x128xf32> to vector<12x128xbf16>
    %c8_76 = arith.constant 8 : index
    %c0_77 = arith.constant 0 : index
    %65 = vector.load %arg10[%c8_76, %c0_77] : memref<48x128xbf16, #tpu.memory_space<vmem>>, vector<12x128xbf16>
    tpu.vector_store %arg10[%c8_76, %c0_77], %64 {strides = array<i32>} : memref<48x128xbf16, #tpu.memory_space<vmem>>, vector<12x128xbf16>,
    %c2_78 = arith.constant 2 : index
    %c0_79 = arith.constant 0 : index
    %c0_80 = arith.constant 0 : index
    %66 = vector.load %arg3[%c2_78, %c0_79, %c0_80] : memref<6x1x128xf32, #tpu.memory_space<vmem>>, vector<1x1x128xf32>
    %67 = vector.shape_cast %66 : vector<1x1x128xf32> to vector<1x128xf32>
    %c2_81 = arith.constant 2 : index
    %c0_82 = arith.constant 0 : index
    %c0_83 = arith.constant 0 : index
    %c0_84 = arith.constant 0 : index
    %68 = vector.load %arg2[%c2_81, %c0_82, %c0_83, %c0_84] : memref<6x3x128x128xbf16, #tpu.memory_space<vmem>>, vector<1x1x128x128xbf16>
    %69 = vector.shape_cast %68 : vector<1x1x128x128xbf16> to vector<128x128xbf16>
    %c2_85 = arith.constant 2 : index
    %c1_86 = arith.constant 1 : index
    %c0_87 = arith.constant 0 : index
    %c0_88 = arith.constant 0 : index
    %70 = vector.load %arg2[%c2_85, %c1_86, %c0_87, %c0_88] : memref<6x3x128x128xbf16, #tpu.memory_space<vmem>>, vector<1x1x128x128xbf16>
    %71 = vector.shape_cast %70 : vector<1x1x128x128xbf16> to vector<128x128xbf16>
    %c2_89 = arith.constant 2 : index
    %c2_90 = arith.constant 2 : index
    %c0_91 = arith.constant 0 : index
    %c0_92 = arith.constant 0 : index
    %72 = vector.load %arg2[%c2_89, %c2_90, %c0_91, %c0_92] : memref<6x3x128x128xbf16, #tpu.memory_space<vmem>>, vector<1x1x128x128xbf16>
    %73 = vector.shape_cast %72 : vector<1x1x128x128xbf16> to vector<128x128xbf16>
    %c4 = arith.constant 4 : index
    %c0_93 = arith.constant 0 : index
    %74 = vector.load %arg10[%c4, %c0_93] : memref<48x128xbf16, #tpu.memory_space<vmem>>, vector<16x128xbf16>
    %cst_94 = arith.constant dense<0.000000e+00> : vector<16x128xf32>
    %75 = tpu.matmul %74, %69, %cst_94 {dimension_numbers = #tpu.dot_dimension_numbers<[1], [0], [0], [1], [0, 0, 1, 1], [], []>} : vector<16x128xbf16>, vector<128x128xbf16>, vector<16x128xf32> -> vector<16x128xf32>
    %c6_95 = arith.constant 6 : index
    %c0_96 = arith.constant 0 : index
    %76 = vector.load %arg10[%c6_95, %c0_96] : memref<48x128xbf16, #tpu.memory_space<vmem>>, vector<16x128xbf16>
    %cst_97 = arith.constant dense<0.000000e+00> : vector<16x128xf32>
    %77 = tpu.matmul %76, %71, %cst_97 {dimension_numbers = #tpu.dot_dimension_numbers<[1], [0], [0], [1], [0, 0, 1, 1], [], []>} : vector<16x128xbf16>, vector<128x128xbf16>, vector<16x128xf32> -> vector<16x128xf32>
    %78 = arith.addf %75, %77 : vector<16x128xf32>
    %c8_98 = arith.constant 8 : index
    %c0_99 = arith.constant 0 : index
    %79 = vector.load %arg10[%c8_98, %c0_99] : memref<48x128xbf16, #tpu.memory_space<vmem>>, vector<16x128xbf16>
    %cst_100 = arith.constant dense<0.000000e+00> : vector<16x128xf32>
    %80 = tpu.matmul %79, %73, %cst_100 {dimension_numbers = #tpu.dot_dimension_numbers<[1], [0], [0], [1], [0, 0, 1, 1], [], []>} : vector<16x128xbf16>, vector<128x128xbf16>, vector<16x128xf32> -> vector<16x128xf32>
    %81 = arith.addf %78, %80 : vector<16x128xf32>
    %82 = vector.broadcast %67 : vector<1x128xf32> to vector<16x128xf32>
    %83 = arith.addf %81, %82 : vector<16x128xf32>
    %cst_101 = arith.constant 0.000000e+00 : f32
    %84 = vector.broadcast %cst_101 : f32 to vector<16x128xf32>
    %85 = arith.maximumf %83, %84 : vector<16x128xf32>
    %86 = arith.truncf %85 : vector<16x128xf32> to vector<16x128xbf16>
    %c8_102 = arith.constant 8 : index
    %c0_103 = arith.constant 0 : index
    %87 = vector.load %arg11[%c8_102, %c0_103] : memref<48x128xbf16, #tpu.memory_space<vmem>>, vector<16x128xbf16>
    tpu.vector_store %arg11[%c8_102, %c0_103], %86 {strides = array<i32>} : memref<48x128xbf16, #tpu.memory_space<vmem>>, vector<16x128xbf16>,
    %c3 = arith.constant 3 : index
    %c0_104 = arith.constant 0 : index
    %c0_105 = arith.constant 0 : index
    %88 = vector.load %arg3[%c3, %c0_104, %c0_105] : memref<6x1x128xf32, #tpu.memory_space<vmem>>, vector<1x1x128xf32>
    %89 = vector.shape_cast %88 : vector<1x1x128xf32> to vector<1x128xf32>
    %c3_106 = arith.constant 3 : index
    %c0_107 = arith.constant 0 : index
    %c0_108 = arith.constant 0 : index
    %c0_109 = arith.constant 0 : index
    %90 = vector.load %arg2[%c3_106, %c0_107, %c0_108, %c0_109] : memref<6x3x128x128xbf16, #tpu.memory_space<vmem>>, vector<1x1x128x128xbf16>
    %91 = vector.shape_cast %90 : vector<1x1x128x128xbf16> to vector<128x128xbf16>
    %c3_110 = arith.constant 3 : index
    %c1_111 = arith.constant 1 : index
    %c0_112 = arith.constant 0 : index
    %c0_113 = arith.constant 0 : index
    %92 = vector.load %arg2[%c3_110, %c1_111, %c0_112, %c0_113] : memref<6x3x128x128xbf16, #tpu.memory_space<vmem>>, vector<1x1x128x128xbf16>
    %93 = vector.shape_cast %92 : vector<1x1x128x128xbf16> to vector<128x128xbf16>
    %c3_114 = arith.constant 3 : index
    %c2_115 = arith.constant 2 : index
    %c0_116 = arith.constant 0 : index
    %c0_117 = arith.constant 0 : index
    %94 = vector.load %arg2[%c3_114, %c2_115, %c0_116, %c0_117] : memref<6x3x128x128xbf16, #tpu.memory_space<vmem>>, vector<1x1x128x128xbf16>
    %95 = vector.shape_cast %94 : vector<1x1x128x128xbf16> to vector<128x128xbf16>
    %c4_118 = arith.constant 4 : index
    %c0_119 = arith.constant 0 : index
    %96 = vector.load %arg11[%c4_118, %c0_119] : memref<48x128xbf16, #tpu.memory_space<vmem>>, vector<20x128xbf16>
    %cst_120 = arith.constant dense<0.000000e+00> : vector<20x128xf32>
    %97 = tpu.matmul %96, %91, %cst_120 {dimension_numbers = #tpu.dot_dimension_numbers<[1], [0], [0], [1], [0, 0, 1, 1], [], []>} : vector<20x128xbf16>, vector<128x128xbf16>, vector<20x128xf32> -> vector<20x128xf32>
    %c6_121 = arith.constant 6 : index
    %c0_122 = arith.constant 0 : index
    %98 = vector.load %arg11[%c6_121, %c0_122] : memref<48x128xbf16, #tpu.memory_space<vmem>>, vector<20x128xbf16>
    %cst_123 = arith.constant dense<0.000000e+00> : vector<20x128xf32>
    %99 = tpu.matmul %98, %93, %cst_123 {dimension_numbers = #tpu.dot_dimension_numbers<[1], [0], [0], [1], [0, 0, 1, 1], [], []>} : vector<20x128xbf16>, vector<128x128xbf16>, vector<20x128xf32> -> vector<20x128xf32>
    %100 = arith.addf %97, %99 : vector<20x128xf32>
    %c8_124 = arith.constant 8 : index
    %c0_125 = arith.constant 0 : index
    %101 = vector.load %arg11[%c8_124, %c0_125] : memref<48x128xbf16, #tpu.memory_space<vmem>>, vector<20x128xbf16>
    %cst_126 = arith.constant dense<0.000000e+00> : vector<20x128xf32>
    %102 = tpu.matmul %101, %95, %cst_126 {dimension_numbers = #tpu.dot_dimension_numbers<[1], [0], [0], [1], [0, 0, 1, 1], [], []>} : vector<20x128xbf16>, vector<128x128xbf16>, vector<20x128xf32> -> vector<20x128xf32>
    %103 = arith.addf %100, %102 : vector<20x128xf32>
    %104 = vector.broadcast %89 : vector<1x128xf32> to vector<20x128xf32>
    %105 = arith.addf %103, %104 : vector<20x128xf32>
    %c0_127 = arith.constant 0 : index
    %c0_128 = arith.constant 0 : index
    %106 = vector.load %arg9[%c0_127, %c0_128] : memref<40x128xf32, #tpu.memory_space<vmem>>, vector<20x128xf32>
    %107 = arith.addf %105, %106 : vector<20x128xf32>
    %cst_129 = arith.constant 0.000000e+00 : f32
    %108 = vector.broadcast %cst_129 : f32 to vector<20x128xf32>
    %109 = arith.maximumf %107, %108 : vector<20x128xf32>
    %c0_130 = arith.constant 0 : index
    %c0_131 = arith.constant 0 : index
    %110 = vector.load %arg9[%c0_130, %c0_131] : memref<40x128xf32, #tpu.memory_space<vmem>>, vector<20x128xf32>
    tpu.vector_store %arg9[%c0_130, %c0_131], %109 {strides = array<i32>} : memref<40x128xf32, #tpu.memory_space<vmem>>, vector<20x128xf32>,
    %111 = arith.truncf %109 : vector<20x128xf32> to vector<20x128xbf16>
    %c8_132 = arith.constant 8 : index
    %c0_133 = arith.constant 0 : index
    %112 = vector.load %arg10[%c8_132, %c0_133] : memref<48x128xbf16, #tpu.memory_space<vmem>>, vector<20x128xbf16>
    tpu.vector_store %arg10[%c8_132, %c0_133], %111 {strides = array<i32>} : memref<48x128xbf16, #tpu.memory_space<vmem>>, vector<20x128xbf16>,
    %c4_134 = arith.constant 4 : index
    %c0_135 = arith.constant 0 : index
    %c0_136 = arith.constant 0 : index
    %113 = vector.load %arg3[%c4_134, %c0_135, %c0_136] : memref<6x1x128xf32, #tpu.memory_space<vmem>>, vector<1x1x128xf32>
    %114 = vector.shape_cast %113 : vector<1x1x128xf32> to vector<1x128xf32>
    %c4_137 = arith.constant 4 : index
    %c0_138 = arith.constant 0 : index
    %c0_139 = arith.constant 0 : index
    %c0_140 = arith.constant 0 : index
    %115 = vector.load %arg2[%c4_137, %c0_138, %c0_139, %c0_140] : memref<6x3x128x128xbf16, #tpu.memory_space<vmem>>, vector<1x1x128x128xbf16>
    %116 = vector.shape_cast %115 : vector<1x1x128x128xbf16> to vector<128x128xbf16>
    %c4_141 = arith.constant 4 : index
    %c1_142 = arith.constant 1 : index
    %c0_143 = arith.constant 0 : index
    %c0_144 = arith.constant 0 : index
    %117 = vector.load %arg2[%c4_141, %c1_142, %c0_143, %c0_144] : memref<6x3x128x128xbf16, #tpu.memory_space<vmem>>, vector<1x1x128x128xbf16>
    %118 = vector.shape_cast %117 : vector<1x1x128x128xbf16> to vector<128x128xbf16>
    %c4_145 = arith.constant 4 : index
    %c2_146 = arith.constant 2 : index
    %c0_147 = arith.constant 0 : index
    %c0_148 = arith.constant 0 : index
    %119 = vector.load %arg2[%c4_145, %c2_146, %c0_147, %c0_148] : memref<6x3x128x128xbf16, #tpu.memory_space<vmem>>, vector<1x1x128x128xbf16>
    %120 = vector.shape_cast %119 : vector<1x1x128x128xbf16> to vector<128x128xbf16>
    %c0_149 = arith.constant 0 : index
    %c0_150 = arith.constant 0 : index
    %121 = vector.load %arg10[%c0_149, %c0_150] : memref<48x128xbf16, #tpu.memory_space<vmem>>, vector<28x128xbf16>
    %cst_151 = arith.constant dense<0.000000e+00> : vector<28x128xf32>
    %122 = tpu.matmul %121, %116, %cst_151 {dimension_numbers = #tpu.dot_dimension_numbers<[1], [0], [0], [1], [0, 0, 1, 1], [], []>} : vector<28x128xbf16>, vector<128x128xbf16>, vector<28x128xf32> -> vector<28x128xf32>
    %c4_152 = arith.constant 4 : index
    %c0_153 = arith.constant 0 : index
    %123 = vector.load %arg10[%c4_152, %c0_153] : memref<48x128xbf16, #tpu.memory_space<vmem>>, vector<28x128xbf16>
    %cst_154 = arith.constant dense<0.000000e+00> : vector<28x128xf32>
    %124 = tpu.matmul %123, %118, %cst_154 {dimension_numbers = #tpu.dot_dimension_numbers<[1], [0], [0], [1], [0, 0, 1, 1], [], []>} : vector<28x128xbf16>, vector<128x128xbf16>, vector<28x128xf32> -> vector<28x128xf32>
    %125 = arith.addf %122, %124 : vector<28x128xf32>
    %c8_155 = arith.constant 8 : index
    %c0_156 = arith.constant 0 : index
    %126 = vector.load %arg10[%c8_155, %c0_156] : memref<48x128xbf16, #tpu.memory_space<vmem>>, vector<28x128xbf16>
    %cst_157 = arith.constant dense<0.000000e+00> : vector<28x128xf32>
    %127 = tpu.matmul %126, %120, %cst_157 {dimension_numbers = #tpu.dot_dimension_numbers<[1], [0], [0], [1], [0, 0, 1, 1], [], []>} : vector<28x128xbf16>, vector<128x128xbf16>, vector<28x128xf32> -> vector<28x128xf32>
    %128 = arith.addf %125, %127 : vector<28x128xf32>
    %129 = vector.broadcast %114 : vector<1x128xf32> to vector<28x128xf32>
    %130 = arith.addf %128, %129 : vector<28x128xf32>
    %cst_158 = arith.constant 0.000000e+00 : f32
    %131 = vector.broadcast %cst_158 : f32 to vector<28x128xf32>
    %132 = arith.maximumf %130, %131 : vector<28x128xf32>
    %133 = arith.truncf %132 : vector<28x128xf32> to vector<28x128xbf16>
    %c8_159 = arith.constant 8 : index
    %c0_160 = arith.constant 0 : index
    %134 = vector.load %arg11[%c8_159, %c0_160] : memref<48x128xbf16, #tpu.memory_space<vmem>>, vector<28x128xbf16>
    tpu.vector_store %arg11[%c8_159, %c0_160], %133 {strides = array<i32>} : memref<48x128xbf16, #tpu.memory_space<vmem>>, vector<28x128xbf16>,
    %c5 = arith.constant 5 : index
    %c0_161 = arith.constant 0 : index
    %c0_162 = arith.constant 0 : index
    %135 = vector.load %arg3[%c5, %c0_161, %c0_162] : memref<6x1x128xf32, #tpu.memory_space<vmem>>, vector<1x1x128xf32>
    %136 = vector.shape_cast %135 : vector<1x1x128xf32> to vector<1x128xf32>
    %c5_163 = arith.constant 5 : index
    %c0_164 = arith.constant 0 : index
    %c0_165 = arith.constant 0 : index
    %c0_166 = arith.constant 0 : index
    %137 = vector.load %arg2[%c5_163, %c0_164, %c0_165, %c0_166] : memref<6x3x128x128xbf16, #tpu.memory_space<vmem>>, vector<1x1x128x128xbf16>
    %138 = vector.shape_cast %137 : vector<1x1x128x128xbf16> to vector<128x128xbf16>
    %c5_167 = arith.constant 5 : index
    %c1_168 = arith.constant 1 : index
    %c0_169 = arith.constant 0 : index
    %c0_170 = arith.constant 0 : index
    %139 = vector.load %arg2[%c5_167, %c1_168, %c0_169, %c0_170] : memref<6x3x128x128xbf16, #tpu.memory_space<vmem>>, vector<1x1x128x128xbf16>
    %140 = vector.shape_cast %139 : vector<1x1x128x128xbf16> to vector<128x128xbf16>
    %c5_171 = arith.constant 5 : index
    %c2_172 = arith.constant 2 : index
    %c0_173 = arith.constant 0 : index
    %c0_174 = arith.constant 0 : index
    %141 = vector.load %arg2[%c5_171, %c2_172, %c0_173, %c0_174] : memref<6x3x128x128xbf16, #tpu.memory_space<vmem>>, vector<1x1x128x128xbf16>
    %142 = vector.shape_cast %141 : vector<1x1x128x128xbf16> to vector<128x128xbf16>
    %c0_175 = arith.constant 0 : index
    %c0_176 = arith.constant 0 : index
    %143 = vector.load %arg11[%c0_175, %c0_176] : memref<48x128xbf16, #tpu.memory_space<vmem>>, vector<36x128xbf16>
    %cst_177 = arith.constant dense<0.000000e+00> : vector<36x128xf32>
    %144 = tpu.matmul %143, %138, %cst_177 {dimension_numbers = #tpu.dot_dimension_numbers<[1], [0], [0], [1], [0, 0, 1, 1], [], []>} : vector<36x128xbf16>, vector<128x128xbf16>, vector<36x128xf32> -> vector<36x128xf32>
    %c4_178 = arith.constant 4 : index
    %c0_179 = arith.constant 0 : index
    %145 = vector.load %arg11[%c4_178, %c0_179] : memref<48x128xbf16, #tpu.memory_space<vmem>>, vector<36x128xbf16>
    %cst_180 = arith.constant dense<0.000000e+00> : vector<36x128xf32>
    %146 = tpu.matmul %145, %140, %cst_180 {dimension_numbers = #tpu.dot_dimension_numbers<[1], [0], [0], [1], [0, 0, 1, 1], [], []>} : vector<36x128xbf16>, vector<128x128xbf16>, vector<36x128xf32> -> vector<36x128xf32>
    %147 = arith.addf %144, %146 : vector<36x128xf32>
    %c8_181 = arith.constant 8 : index
    %c0_182 = arith.constant 0 : index
    %148 = vector.load %arg11[%c8_181, %c0_182] : memref<48x128xbf16, #tpu.memory_space<vmem>>, vector<36x128xbf16>
    %cst_183 = arith.constant dense<0.000000e+00> : vector<36x128xf32>
    %149 = tpu.matmul %148, %142, %cst_183 {dimension_numbers = #tpu.dot_dimension_numbers<[1], [0], [0], [1], [0, 0, 1, 1], [], []>} : vector<36x128xbf16>, vector<128x128xbf16>, vector<36x128xf32> -> vector<36x128xf32>
    %150 = arith.addf %147, %149 : vector<36x128xf32>
    %151 = vector.broadcast %136 : vector<1x128xf32> to vector<36x128xf32>
    %152 = arith.addf %150, %151 : vector<36x128xf32>
    %c0_184 = arith.constant 0 : index
    %c0_185 = arith.constant 0 : index
    %153 = vector.load %arg9[%c0_184, %c0_185] : memref<40x128xf32, #tpu.memory_space<vmem>>, vector<36x128xf32>
    %154 = arith.addf %152, %153 : vector<36x128xf32>
    %cst_186 = arith.constant 0.000000e+00 : f32
    %155 = vector.broadcast %cst_186 : f32 to vector<36x128xf32>
    %156 = arith.maximumf %154, %155 : vector<36x128xf32>
    %c0_187 = arith.constant 0 : index
    %c0_188 = arith.constant 0 : index
    %157 = vector.load %arg9[%c0_187, %c0_188] : memref<40x128xf32, #tpu.memory_space<vmem>>, vector<36x128xf32>
    tpu.vector_store %arg9[%c0_187, %c0_188], %156 {strides = array<i32>} : memref<40x128xf32, #tpu.memory_space<vmem>>, vector<36x128xf32>,
    %158 = arith.truncf %156 : vector<36x128xf32> to vector<36x128xbf16>
    %c8_189 = arith.constant 8 : index
    %c0_190 = arith.constant 0 : index
    %159 = vector.load %arg10[%c8_189, %c0_190] : memref<48x128xbf16, #tpu.memory_space<vmem>>, vector<36x128xbf16>
    tpu.vector_store %arg10[%c8_189, %c0_190], %158 {strides = array<i32>} : memref<48x128xbf16, #tpu.memory_space<vmem>>, vector<36x128xbf16>,
    %160 = tpu.iota {dimensions = array<i32: 1>} : vector<1x128xi32>
    %c16_i32 = arith.constant 16 : i32
    %161 = vector.broadcast %c16_i32 : i32 to vector<1x128xi32>
    %162 = arith.cmpi slt, %160, %161 : vector<1x128xi32>
    %c0_191 = arith.constant 0 : index
    %c0_192 = arith.constant 0 : index
    %163 = vector.load %arg6[%c0_191, %c0_192] : memref<1x128xf32, #tpu.memory_space<vmem>>, vector<1x128xf32>
    %c0_193 = arith.constant 0 : index
    %c0_194 = arith.constant 0 : index
    %164 = vector.load %arg7[%c0_193, %c0_194] : memref<1x128xf32, #tpu.memory_space<vmem>>, vector<1x128xf32>
    %c0_195 = arith.constant 0 : index
    %c0_196 = arith.constant 0 : index
    %165 = vector.load %arg9[%c0_195, %c0_196] : memref<40x128xf32, #tpu.memory_space<vmem>>, vector<36x128xf32>
    %cst_197 = arith.constant 0.000000e+00 : f32
    %166 = vector.shape_cast %162 : vector<1x128xi1> to vector<1x128xi1>
    %167 = vector.broadcast %166 : vector<1x128xi1> to vector<36x128xi1>
    %168 = vector.broadcast %cst_197 : f32 to vector<36x128xf32>
    %169 = arith.select %167, %165, %168 : vector<36x128xi1>, vector<36x128xf32>
    %cst_198 = arith.constant dense<0.000000e+00> : vector<36xf32>
    %170 = vector.multi_reduction <add>, %169, %cst_198 [1] : vector<36x128xf32> to vector<36xf32>
    %171 = vector.shape_cast %170 : vector<36xf32> to vector<36x1xf32>
    %cst_199 = arith.constant 6.250000e-02 : f32
    %172 = vector.broadcast %cst_199 : f32 to vector<36x1xf32>
    %173 = arith.mulf %171, %172 : vector<36x1xf32>
    %174 = vector.broadcast %173 : vector<36x1xf32> to vector<36x128xf32>
    %175 = arith.subf %165, %174 : vector<36x128xf32>
    %cst_200 = arith.constant 0.000000e+00 : f32
    %176 = vector.shape_cast %162 : vector<1x128xi1> to vector<1x128xi1>
    %177 = vector.broadcast %176 : vector<1x128xi1> to vector<36x128xi1>
    %178 = vector.broadcast %cst_200 : f32 to vector<36x128xf32>
    %179 = arith.select %177, %175, %178 : vector<36x128xi1>, vector<36x128xf32>
    %180 = arith.mulf %179, %179 : vector<36x128xf32>
    %cst_201 = arith.constant dense<0.000000e+00> : vector<36xf32>
    %181 = vector.multi_reduction <add>, %180, %cst_201 [1] : vector<36x128xf32> to vector<36xf32>
    %182 = vector.shape_cast %181 : vector<36xf32> to vector<36x1xf32>
    %cst_202 = arith.constant 6.250000e-02 : f32
    %183 = vector.broadcast %cst_202 : f32 to vector<36x1xf32>
    %184 = arith.mulf %182, %183 : vector<36x1xf32>
    %cst_203 = arith.constant 9.99999974E-6 : f32
    %185 = vector.broadcast %cst_203 : f32 to vector<36x1xf32>
    %186 = arith.addf %184, %185 : vector<36x1xf32>
    %187 = math.rsqrt %186 : vector<36x1xf32>
    %188 = vector.broadcast %187 : vector<36x1xf32> to vector<36x128xf32>
    %189 = arith.mulf %175, %188 : vector<36x128xf32>
    %190 = vector.broadcast %163 : vector<1x128xf32> to vector<36x128xf32>
    %191 = arith.mulf %189, %190 : vector<36x128xf32>
    %192 = vector.broadcast %164 : vector<1x128xf32> to vector<36x128xf32>
    %193 = arith.addf %191, %192 : vector<36x128xf32>
    %c0_204 = arith.constant 0 : index
    %c0_205 = arith.constant 0 : index
    %c0_206 = arith.constant 0 : index
    %194 = vector.load %arg8[%c0_204, %c0_205, %c0_206] : memref<1x36x128xf32, #tpu.memory_space<vmem>>, vector<1x36x128xf32>
    %195 = vector.shape_cast %194 : vector<1x36x128xf32> to vector<36x128xf32>
    %196 = vector.shape_cast %193 : vector<36x128xf32> to vector<1x36x128xf32>
    tpu.vector_store %arg8[%c0_204, %c0_205, %c0_206], %196 {strides = array<i32>} : memref<1x36x128xf32, #tpu.memory_space<vmem>>, vector<1x36x128xf32>,
    return
  }
  func.func @transform_0(%arg0: i32) -> (i32, i32, i32) {
    %c0_i32 = arith.constant 0 : i32
    %c0_i32_0 = arith.constant 0 : i32
    %c0_i32_1 = arith.constant 0 : i32
    return %arg0, %c0_i32, %c0_i32_0 : i32, i32, i32
  }
  func.func @transform_1(%arg0: i32) -> (i32, i32, i32, i32) {
    %c0_i32 = arith.constant 0 : i32
    %c0_i32_0 = arith.constant 0 : i32
    %c0_i32_1 = arith.constant 0 : i32
    %c0_i32_2 = arith.constant 0 : i32
    %c0_i32_3 = arith.constant 0 : i32
    return %c0_i32, %c0_i32_0, %c0_i32_1, %c0_i32_2 : i32, i32, i32, i32
  }
  func.func @transform_2(%arg0: i32) -> (i32, i32, i32) {
    %c0_i32 = arith.constant 0 : i32
    %c0_i32_0 = arith.constant 0 : i32
    %c0_i32_1 = arith.constant 0 : i32
    %c0_i32_2 = arith.constant 0 : i32
    return %c0_i32, %c0_i32_0, %c0_i32_1 : i32, i32, i32
  }
  func.func @transform_3(%arg0: i32) -> (i32, i32) {
    %c0_i32 = arith.constant 0 : i32
    %c0_i32_0 = arith.constant 0 : i32
    %c0_i32_1 = arith.constant 0 : i32
    return %c0_i32, %c0_i32_0 : i32, i32
  }
  func.func @transform_4(%arg0: i32) -> (i32, i32) {
    %c0_i32 = arith.constant 0 : i32
    %c0_i32_0 = arith.constant 0 : i32
    %c0_i32_1 = arith.constant 0 : i32
    return %c0_i32, %c0_i32_0 : i32, i32
  }
  func.func @transform_5(%arg0: i32) -> (i32, i32) {
    %c0_i32 = arith.constant 0 : i32
    %c0_i32_0 = arith.constant 0 : i32
    %c0_i32_1 = arith.constant 0 : i32
    return %c0_i32, %c0_i32_0 : i32, i32
  }
  func.func @transform_6(%arg0: i32) -> (i32, i32) {
    %c0_i32 = arith.constant 0 : i32
    %c0_i32_0 = arith.constant 0 : i32
    %c0_i32_1 = arith.constant 0 : i32
    return %c0_i32, %c0_i32_0 : i32, i32
  }
  func.func @transform_7(%arg0: i32) -> (i32, i32, i32) {
    %c0_i32 = arith.constant 0 : i32
    %c0_i32_0 = arith.constant 0 : i32
    %c0_i32_1 = arith.constant 0 : i32
    return %arg0, %c0_i32, %c0_i32_0 : i32, i32, i32
  }
}

</mosaic_0001>

<bundles_post_ra>
// kernel: tpu_custom_call.1
= control target key start
LH: loop header
LB: loop body
LE: loop exit
PB: predicated region body
PF: predicated region fallthrough
CT: control target
= control target key end

     0   :  { %12 = vsyncpa [#allocation6], 0  ;;  %s4626_s0 = inlined_call_operand.hbm [shape: f32[2,8,8], index: 0, kind: input, shape index: {}]   ;;  %s4627_s1 = inlined_call_operand.hbm [shape: bf16[6,3,128,128], index: 1, kind: input, shape index: {}]   ;;  %s4628_s2 = inlined_call_operand.vmem [shape: f32[6,1,128], index: 2, kind: input, shape index: {}]   ;;  %s4629_s3 = inlined_call_operand.hbm [shape: bf16[128,128], index: 3, kind: input, shape index: {}]   ;;  %s4630_s4 = inlined_call_operand.vmem [shape: f32[1,128], index: 4, kind: input, shape index: {}]   ;;  %s4631_s5 = inlined_call_operand.vmem [shape: f32[1,128], index: 5, kind: input, shape index: {}]   ;;  %s4632_s6 = inlined_call_operand.vmem [shape: f32[1,128], index: 6, kind: input, shape index: {}]   ;;  %s4633_s7 = inlined_call_operand.vmem [shape: f32[2,36,128], index: 7, kind: output, shape index: {}]  }
   0x1   :  { %14 = vsyncpa [#allocation6 + $0x1], 0 }
   0x2   :  { %15 = vsyncpa [#allocation8], 0  ;;  %s4188_s24 = smov 0   ;;  %s4190_s25 = smov 0  }
   0x3   :  { %s4192_s26 = smov 0   ;;  %s4194_s27 = smov 0  }
   0x4 LB: > { %s4207_s28 = sadd.s32 4294967295, %s4138_s27   ;;  %p41_p0 = scmp.ne.s32.totalorder %s4130_s25, %s4126_s24  ;;  %s4138_s27 = sphi %s4194_s27, %s4648_s27   ;;  %s4134_s26 = sphi %s4192_s26, %s4647_s26   ;;  %s4130_s25 = sphi %s4190_s25, %s4646_s25   ;;  %s4126_s24 = sphi %s4188_s24, %s4645_s24  }
   0x5   : > { %p4634_p1 = scmp.eq.s32.totalorder %s4207_s28, 0  ;;  %p3010_p2 = scmp.ge.s32.totalorder %s4138_s27, 1 }
   0x6   : > { %p204_p3 = scmp.lt.s32.totalorder %s4138_s27, 3  ;;  %s4140_s8 = smov [#allocation7]  }
   0x7   : > { %p4215_p4 = por %p4634_p1, %p41_p0  ;;  %s216_s9 = sshll.u32 %s4140_s8, 4  ;;  %s217_s9 = int_to_ptr.vmem [resolvable:$true] %s216_s9 }
   0x8   : > { %p4219_p5 = pnand %p3010_p2, %p204_p3  ;;  %s4141_s11 = smov [#allocation9]  }
   0x9   : > { %s4637_s29 = scalar_select %p4215_p4, 1, 0 }
   0xa   : > { %s4638_s30 = scalar_select %p4219_p5, 1, 0 }
   0xb   : > { %p3795_p6 = pneg %p4219_p5  ;;  %s232_s12 = sshll.u32 %s4141_s11, 4  ;;  %s4231_s12 = int_to_ptr.vmem [resolvable:$true] %s232_s12 }
   0xc   : > { %s4014_s15 = scalar_lea.hbm %s4627_s1, 18432 }
   0xd   : > { %p4227_p7 = pnand %p3795_p6, %p4634_p1  ;;  %p4015_p8 = scmp.ne.s32.totalorder %s4627_s1, %s4014_s15 }
   0xe   : > { %p4021_p12 = scmp.lt.u32.totalorder %s4014_s15, %s4627_s1 }
   0xf   : > { %p4016_p9 = pneg %p4227_p7 }
  0x11   : > { %p4017_p10 = pnand %p4016_p9, %p4015_p8 }
  0x13   : > { %p4018_p11 = pneg %p4017_p10 }
  0x15   : > { %p4023_p13 = pnand %p4021_p12, %p4018_p11 }
  0x17   : > { %4026 = shalt.err (!%p4023_p13)
}
  0x18   : > { %s4027_s20 = scalar_lea.vmem %s217_s9, 18432  ;;  %p4035_p6 = scmp.lt.s32.totalorder %s217_s9, %s217_s9 }
  0x19   : > { %p4028_p0 = scmp.ne.s32.totalorder %s217_s9, %s4027_s20  ;;  %p4036_p1 = scmp.lt.s32.totalorder %s4027_s20, %s4027_s20 }
  0x1b   : > { %p4030_p2 = pnand %p4028_p0, %p4016_p9  ;;  %p4037_p4 = por %p4036_p1, %p4035_p6 }
  0x1d   : > { %p4031_p3 = pneg %p4030_p2 }
  0x1f   : > { %p4038_p5 = pnand %p4037_p4, %p4031_p3 }
  0x21   : > { %4041 = shalt.err (!%p4038_p5)
}
  0x22   : > { %s4142_s21 = smov 64   ;;  %s4143_s22 = smov 4  }
  0x23   : > { %3798 = dma.hbm_to_vmem [thread:$0]  (!%p4227_p7), %s4627_s1, 18432, %s217_s9, [#allocation8], %s4142_s21, %s4142_s21, %s4143_s22  }
  0x24   : > { %s4042_s13 = scalar_lea.hbm %s4629_s3, 1024 }
  0x25   : > { %p4043_p8 = scmp.ne.s32.totalorder %s4629_s3, %s4042_s13  ;;  %p4049_p5 = scmp.lt.u32.totalorder %s4042_s13, %s4629_s3 }
  0x27   : > { %p4045_p1 = pnand %p4043_p8, %p4016_p9 }
  0x29   : > { %p4046_p4 = pneg %p4045_p1 }
  0x2b   : > { %p4051_p10 = pnand %p4049_p5, %p4046_p4 }
  0x2d   : > { %4054 = shalt.err (!%p4051_p10)
}
  0x2e   : > { %s4055_s9 = scalar_lea.vmem %s4231_s12, 1024  ;;  %p4063_p0 = scmp.lt.s32.totalorder %s4231_s12, %s4231_s12 }
  0x2f   : > { %p4056_p11 = scmp.ne.s32.totalorder %s4231_s12, %s4055_s9  ;;  %p4064_p2 = scmp.lt.s32.totalorder %s4055_s9, %s4055_s9 }
  0x31   : > { %p4058_p12 = pnand %p4056_p11, %p4016_p9  ;;  %p4065_p3 = por %p4064_p2, %p4063_p0 }
  0x33   : > { %p4059_p13 = pneg %p4058_p12 }
  0x35   : > { %p4066_p6 = pnand %p4065_p3, %p4059_p13 }
  0x37   : > { %4069 = shalt.err (!%p4066_p6)
}
  0x38   : > { %3801 = dma.hbm_to_vmem [thread:$0]  (!%p4227_p7), %s4629_s3, 1024, %s4231_s12, [#allocation8], %s4142_s21, %s4142_s21, %s4143_s22  }
  0x39   : > { %s4281_s20 = sadd.s32 1, %s4138_s27   ;;  %s28_s23 = sadd.s32 1, %s4134_s26 }
  0x3a   : > { %s25_s10 = ssub.s32 %s4138_s27, %s4281_s20  ;;  %p35_p9 = scmp.ne.s32.totalorder %s4134_s26, %s4130_s25 }
  0x3b   : > { %p26_p8 = scmp.eq.s32.totalorder %s25_s10, 0  ;;  %p36_p1 = scmp.eq.s32.totalorder %s4138_s27, 0 }
  0x3c   : > { %p3808_p4 = scmp.lt.s32.totalorder %s4138_s27, 2  ;;  %s255_s24 = sand.u32 1, %s4134_s26  }
  0x3d   : > { %s4292_s8 = scalar_select %p26_p8, %s4134_s26, %s28_s23  }
  0x3e   : > { %p37_p5 = por %p36_p1, %p35_p9  ;;  %s3014_s11 = sshll.u32 %s255_s24, 3 }
  0x3f   : > { %s3015_s13 = sshll.u32 %s4138_s27, 7  ;;  %s259_s12 = scalar_lea.vmem [#allocation5], %s3014_s11 }
  0x40   : > { %s4298_s16 = scalar_lea.hbm %s4626_s0, %s3015_s13  ;;  %s266_s21 = sshll.u32 %s259_s12, 4  ;;  %s4304_s21 = int_to_ptr.vmem [resolvable:$true] %s266_s21 }
  0x41   : > { %p4300_p7 = pnand %p3808_p4, %p37_p5  ;;  %s256_s27 = scalar_lea.sflag [#allocation6], %s255_s24 }
  0x42   : > { %s4070_s17 = scalar_lea.hbm %s4298_s16, 128  ;;  %s4075_s19 = scalar_lea.hbm %s4626_s0, 256 }
  0x43   : > { %p4071_p10 = scmp.ne.s32.totalorder %s4298_s16, %s4070_s17  ;;  %p4072_p11 = pneg %p4300_p7 }
  0x44   : > { %p4076_p0 = scmp.lt.u32.totalorder %s4298_s16, %s4626_s0  ;;  %p4077_p2 = scmp.lt.u32.totalorder %s4075_s19, %s4070_s17 }
  0x45   : > { %p4073_p12 = pnand %p4072_p11, %p4071_p10  ;;  %p4079_p6 = scmp.lt.u32.totalorder %s4070_s17, %s4298_s16 }
  0x46   : > { %p4078_p3 = por %p4077_p2, %p4076_p0 }
  0x47   : > { %p4074_p13 = pneg %p4073_p12 }
  0x48   : > { %p4080_p9 = por %p4079_p6, %p4078_p3 }
  0x4a   : > { %p4081_p8 = pnand %p4080_p9, %p4074_p13 }
  0x4c   : > { %4084 = shalt.err (!%p4081_p8)
}
  0x4d   : > { %s4085_s24 = scalar_lea.vmem %s4304_s21, 128  ;;  %s4144_s11 = smov [#allocation5]  }
  0x4e   : > { %p4086_p1 = scmp.ne.s32.totalorder %s4304_s21, %s4085_s24  ;;  %s4090_s13 = sshll.u32 %s4144_s11, 4  ;;  %s4091_s13 = int_to_ptr.vmem [resolvable:$false] %s4090_s13 }
  0x4f   : > { %s4092_s14 = scalar_lea.vmem %s4091_s13, 256  ;;  %p4093_p10 = scmp.lt.s32.totalorder %s4304_s21, %s4091_s13 }
  0x50   : > { %p4088_p4 = pnand %p4086_p1, %p4072_p11  ;;  %p4094_p12 = scmp.lt.s32.totalorder %s4092_s14, %s4085_s24 }
  0x52   : > { %p4089_p5 = pneg %p4088_p4  ;;  %p4095_p0 = por %p4094_p12, %p4093_p10 }
  0x54   : > { %p4096_p2 = pnand %p4095_p0, %p4089_p5 }
  0x56   : > { %4099 = shalt.err (!%p4096_p2)
}
  0x57   : > { %3805 = dma.hbm_to_vmem [thread:$0]  (!%p4300_p7), %s4298_s16, 128, %s4304_s21, %s256_s27  }
  0x58   : > { %p4641_p13 = scmp.ne.s32.totalorder %s4638_s30, 0 }
  0x59   : > { %s277_s15 = sand.u32 (!%p4641_p13), 1, %s4130_s25   ;;  %p4642_p11 = scmp.ne.s32.totalorder (!%p4641_p13), %s4637_s29, 0 }
  0x5a   : > { %275 = sbr.rel (%p4641_p13) target bundleno = 2173 (0x87d), region = 48  ;;  %s4334_s12 = sshll.u32 (!%p4641_p13), %s277_s15, 3 }
  0x5b   : > { %s278_s17 = scalar_lea.sflag (!%p4641_p13), [#allocation6], %s277_s15  ;;  %s281_s9 = scalar_lea.vmem (!%p4641_p13), [#allocation5], %s4334_s12 }
  0x61   : > { %4117 = dma.done.wait (%p4642_p11), %s278_s17, 128  }
  0x62   : > { %4119 = vsyncadd (%p4642_p11), %s278_s17, 4294967168  ;;  %p4643_p3 = scmp.eq.s32.totalorder %s4207_s28, 0 }
  0x64   : > { %4121 = dma.done.wait (%p4643_p3), [#allocation8], 19456   ;;  %p4644_p7 = pmov %p4643_p3 }
  0x65   : > { %v4145_v0 = vmov 0.0   ;;  %vm4146_vm0 = vmmov 0   ;;  %v4147_v1 = vmov 0   ;;  %v3850_v2 = vld [vmem:[#allocation9] sm:$0xff]   ;;  %v3851_v3 = vld [vmem:[#allocation9 + $0x8] sm:$0xff]   ;;  %v3852_v4 = vld [vmem:[#allocation9 + $0x10] sm:$0xff]  }
  0x66   : > { %4123 = vsyncadd (%p4644_p7), [#allocation8], 4294947840  ;;  %3372 = vmatprep.subr.bf16.mxu1 %v4145_v0  ;;  %326 = vst [vmem:[#allocation2] sm:$0xff] %v4145_v0  ;;  %3388 = vmatprep.mubr.msk.bf16.mxu1 %vm4146_vm0, %v4145_v0  ;;  %vm338_vm1 = vcmask 64512   ;;  %v337_v5 = vld [vmem:[%s281_s9] sm:$0xff]  ;;  %v3859_v7 = vld [vmem:[#allocation7] sm:$0xff]  }
  0x67   : > { %327 = vst [vmem:[#allocation2 + $0x8] sm:$0xff] %v4145_v0  ;;  %328 = vst [vmem:[#allocation2 + $0x10] sm:$0xff] %v4145_v0  ;;  %3412 = vmatprep.subr.bf16.mxu0 %v4145_v0  ;;  %3428 = vmatprep.mubr.msk.bf16.mxu0 %vm4146_vm0, %v4145_v0  ;;  %v3853_v6 = vld [vmem:[#allocation9 + $0x18] sm:$0xff]   ;;  %v3861_v8 = vld [vmem:[#allocation7 + $0x8] sm:$0xff]   ;;  %vm515_vm2 = vsmask.f32 4352 }
  0x68   : > { %330 = vst [vmem:[#allocation2 + $0x20] sm:$0xff] %v4145_v0  ;;  %331 = vst [vmem:[#allocation3] sm:$0xff] %v4147_v1  ;;  %3373 = vmatpush3.bf16.msra.mxu1 %v3850_v2  ;;  %3413 = vmatpush3.bf16.msra.mxu0 %v3859_v7  ;;  %v3854_v9 = vld [vmem:[#allocation9 + $0x20] sm:$0xff]   ;;  %v3863_v11 = vld [vmem:[#allocation7 + $0x10] sm:$0xff]   ;;  %vm714_vm3 = vcmask 1043456   ;;  %vm991_vm4 = vcmask 1044480  }
  0x69   : > { %332 = vst [vmem:[#allocation3 + $0x8] sm:$0xff] %v4147_v1  ;;  %333 = vst [vmem:[#allocation3 + $0x10] sm:$0xff] %v4147_v1  ;;  %3374 = vmatprep.subr.bf16.mxu1 %v4145_v0  ;;  %3414 = vmatprep.subr.bf16.mxu0 %v4145_v0  ;;  %v3855_v13 = vld [vmem:[#allocation9 + $0x28] sm:$0xff]   ;;  %v3865_v15 = vld [vmem:[#allocation7 + $0x18] sm:$0xff]   ;;  %vm1359_vm5 = vcmask 1045504   ;;  %p320_p6 = scmp.lt.s32.totalorder %s4207_s28, 1 }
  0x6a   : > { %334 = vst [vmem:[#allocation4] sm:$0xff] %v4147_v1  ;;  %335 = vst [vmem:[#allocation4 + $0x8] sm:$0xff] %v4147_v1  ;;  %v3856_v16 = vld [vmem:[#allocation9 + $0x30] sm:$0xff]   ;;  %v3867_v17 = vld [vmem:[#allocation7 + $0x20] sm:$0xff]  }
  0x6b   : > { %336 = vst [vmem:[#allocation4 + $0x10] sm:$0xff] %v4147_v1  ;;  %339 = vst.msk [vmem:[#allocation2] sm:$0xff] %vm338_vm1, %v337_v5  ;;  %v3857_v18 = vld [vmem:[#allocation9 + $0x38] sm:$0xff]   ;;  %v3869_v19 = vld [vmem:[#allocation7 + $0x28] sm:$0xff]   ;;  %s4650_s28 = smov (!%p320_p6, %s4207_s28), 1 }
  0x6c   : > { %3375 = vmatpush3.bf16.msra.mxu1 %v3851_v3  ;;  %3415 = vmatpush3.bf16.msra.mxu0 %v3861_v8  ;;  %v3858_v24 = vld [vmem:[#allocation7 + $0x40] sm:$0xff]   ;;  %v3871_v27 = vld [vmem:[#allocation7 + $0x30] sm:$0xff]   ;;  %v3860_v29 = vld [vmem:[#allocation7 + $0x48] sm:$0xff]   ;;  %s3784_s15 = smul.u32 40, %s4650_s28 }
  0x6d   : > { %3376 = vmatprep.subr.bf16.mxu1 %v4145_v0  ;;  %3416 = vmatprep.subr.bf16.mxu0 %v4145_v0  ;;  %v3873_v30 = vld [vmem:[#allocation7 + $0x38] sm:$0xff]   ;;  %v3862_v38 = vld [vmem:[#allocation7 + $0x50] sm:$0xff]   ;;  %v3866_v40 = vld [vmem:[#allocation7 + $0x60] sm:$0xff]  }
  0x6e   : > { %v3864_v39 = vld [vmem:[#allocation7 + $0x58] sm:$0xff]   ;;  %v3868_v41 = vld [vmem:[#allocation7 + $0x68] sm:$0xff]   ;;  %v3870_v42 = vld [vmem:[#allocation7 + $0x70] sm:$0xff]   ;;  %s324_s21 = scalar_lea.vmem %s4633_s7, %s3784_s15 }
  0x6f   : > { %v3872_v43 = vld [vmem:[#allocation7 + $0x78] sm:$0xff]   ;;  %v3874_v45 = vld [vmem:[#allocation7 + $0x80] sm:$0xff]   ;;  %v3875_v47 = vld [vmem:[#allocation7 + $0x88] sm:$0xff]  }
  0x70   : > { %3377 = vmatpush3.bf16.msra.mxu1 %v3852_v4  ;;  %3417 = vmatpush3.bf16.msra.mxu0 %v3863_v11  ;;  %v4366_v20 = vld [vmem:[#allocation3 + $0x8] sm:$0x1]  ;;  %v3876_v48 = vld [vmem:[#allocation7 + $0x90] sm:$0xff]   ;;  %v3877_v49 = vld [vmem:[#allocation7 + $0x98] sm:$0xff]  }
  0x71   : > { %3378 = vmatprep.subr.bf16.mxu1 %v4145_v0  ;;  %3418 = vmatprep.subr.bf16.mxu0 %v4145_v0  ;;  %v525_v26 = vshll.u32 %v4366_v20, 16  ;;  %v716_v35 = vrot.slane %v4366_v20, 4  ;;  %v3878_v50 = vld [vmem:[#allocation7 + $0xa0] sm:$0xff]   ;;  %v3879_v51 = vld [vmem:[#allocation7 + $0xa8] sm:$0xff]   ;;  %v3880_v52 = vld [vmem:[#allocation7 + $0xb0] sm:$0xff]  }
  0x72   : > { %v340_v10 = vld [vmem:[#allocation2] sm:$0xff]  ;;  %v3882_v55 = vld [vmem:[#allocation7 + $0xc0] sm:$0xff]   ;;  %v3884_v57 = vld [vmem:[#allocation7 + $0xc8] sm:$0xff]  }
  0x73   : > { %v341_v12 = vpack.c.bf16 %v340_v10, %v340_v10  ;;  %v527_v32 = vrot.slane %v525_v26, 4  ;;  %v3881_v53 = vld [vmem:[#allocation7 + $0xb8] sm:$0xff]   ;;  %v3883_v56 = vld [vmem:[#allocation7 + $0x100] sm:$0xff]   ;;  %v3885_v58 = vld [vmem:[#allocation7 + $0x108] sm:$0xff]  }
  0x74   : > { %3379 = vmatpush3.bf16.msra.mxu1 %v3853_v6  ;;  %3419 = vmatpush3.bf16.msra.mxu0 %v3865_v15  ;;  %v3886_v59 = vld [vmem:[#allocation7 + $0xd0] sm:$0xff]   ;;  %v3888_v61 = vld [vmem:[#allocation7 + $0xd8] sm:$0xff]   ;;  %v3890_v63 = vld [vmem:[#allocation7 + $0xe0] sm:$0xff]  }
  0x75   : > { %3380 = vmatprep.subr.bf16.mxu1 %v4145_v0  ;;  %v343_v14 = vrot.slane %v341_v12, 4  ;;  %3420 = vmatprep.subr.bf16.mxu0 %v4145_v0  ;;  %v3887_v60 = vld [vmem:[#allocation7 + $0x110] sm:$0xff]   ;;  %v3889_v62 = vld [vmem:[#allocation7 + $0x118] sm:$0xff]   ;;  %v3891_v1 = vld [vmem:[#allocation7 + $0x120] sm:$0xff]  }
  0x76   : > { %v3892_v2 = vld [vmem:[#allocation7 + $0xe8] sm:$0xff]   ;;  %v3894_v4 = vld [vmem:[#allocation7 + $0xf0] sm:$0xff]   ;;  %v3896_v6 = vld [vmem:[#allocation7 + $0xf8] sm:$0xff]  }
  0x77   : > { %345 = vst [vmem:[#allocation3] sm:$0xf0] %v343_v14  ;;  %v3893_v3 = vld [vmem:[#allocation7 + $0x128] sm:$0xff]   ;;  %v3895_v5 = vld [vmem:[#allocation7 + $0x130] sm:$0xff]   ;;  %v3897_v7 = vld [vmem:[#allocation7 + $0x138] sm:$0xff]  }
  0x78   : > { %3381 = vmatpush3.bf16.msra.mxu1 %v3854_v9  ;;  %3421 = vmatpush3.bf16.msra.mxu0 %v3867_v17 }
  0x79   : > { %3382 = vmatprep.subr.bf16.mxu1 %v4145_v0  ;;  %3422 = vmatprep.subr.bf16.mxu0 %v4145_v0 }
  0x7c   : > { %3383 = vmatpush3.bf16.msra.mxu1 %v3855_v13  ;;  %3423 = vmatpush3.bf16.msra.mxu0 %v3869_v19 }
  0x7d   : > { %3384 = vmatprep.subr.bf16.mxu1 %v4145_v0  ;;  %3424 = vmatprep.subr.bf16.mxu0 %v4145_v0 }
  0x7e   : > { %v363_v21 = vld [vmem:[#allocation3] sm:$0xf0] }
  0x7f   : > { %v513_v22 = vld [vmem:[#allocation3] sm:$0xf8]  ;;  %v371_v23 = vrot.slane %v363_v21, 4 }
  0x80   : > { %3385 = vmatpush3.bf16.msra.mxu1 %v3856_v16  ;;  %v517_v25 = vshrl.u32 %v513_v22, 16  ;;  %v520_v28 = vshll.u32 %v513_v22, 16  ;;  %v620_v33 = vrot.slane %v513_v22, 3  ;;  %v711_v34 = vld [vmem:[#allocation3] sm:$0xf0]  ;;  %3425 = vmatpush3.bf16.msra.mxu0 %v3871_v27 }
  0x81   : > { %3386 = vmatprep.subr.bf16.mxu1 %v4145_v0  ;;  %v715_v37 = vrot.slane %v711_v34, 4  ;;  %3426 = vmatprep.subr.bf16.mxu0 %v4145_v0  ;;  %v3054_v22 = vld [vmem:[%s4628_s2] ss:$0 sm:$0xff] }
  0x82   : > { %v519_v31 = vrot.slane %v517_v25, 3  ;;  %v522_v36 = vrot.slane %v520_v28, 4 }
  0x83   : > { %v717_v54 = vsel %vm714_vm3, %v715_v37, %v716_v35 }
  0x84   : > { %3387 = vmatpush3.bf16.msra.mxu1 %v3857_v18  ;;  %3427 = vmatpush3.bf16.msra.mxu0 %v3873_v30  ;;  %v523_v44 = vor.u32 %v522_v36, %v519_v31 }
  0x85   : > { %3392 = vmatprep.subr.bf16.mxu1 %v4145_v0  ;;  %3452 = vmatprep.subr.bf16.mxu0 %v4145_v0 }
  0x86   : > { %v528_v46 = vsel %vm515_vm2, %v523_v44, %v527_v32 }
  0x87   : > { %3389 = vmatmul.mubr.bf16.vlgmr.msra.gmra.mrb[0].mxu1 %v371_v23  ;;  %3429 = vmatmul.mubr.bf16.vlgmr.msra.gmra.mrb[0].mxu0 %v620_v33 }
  0x88   : > { %3393 = vmatpush3.bf16.msra.mxu1 %v3858_v24  ;;  %3408 = vmatprep.mubr.msk.bf16.mxu1 %vm4146_vm0, %v4145_v0 }
  0x89   : > { %3394 = vmatprep.subr.bf16.mxu1 %v4145_v0  ;;  %3468 = vmatprep.mubr.msk.bf16.mxu0 %vm4146_vm0, %v4145_v0 }
  0x8a   : > { %3453 = vmatpush3.bf16.msra.mxu0 %v3883_v56  ;;  %v3902_v56 = vld [vmem:[#allocation7 + $0x160] sm:$0xff]  }
  0x8b   : > { %3454 = vmatprep.subr.bf16.mxu0 %v4145_v0 }
  0x8c   : > { %3395 = vmatpush3.bf16.msra.mxu1 %v3860_v29 }
  0x8d   : > { %3396 = vmatprep.subr.bf16.mxu1 %v4145_v0 }
  0x8e   : > { %3455 = vmatpush3.bf16.msra.mxu0 %v3885_v58  ;;  %v3904_v58 = vld [vmem:[#allocation7 + $0x170] sm:$0xff]  }
  0x8f   : > { %3456 = vmatprep.subr.bf16.mxu0 %v4145_v0 }
  0x90   : > { %3397 = vmatpush3.bf16.msra.mxu1 %v3862_v38 }
  0x91   : > { %3398 = vmatprep.subr.bf16.mxu1 %v4145_v0 }
  0x92   : > { %3457 = vmatpush3.bf16.msra.mxu0 %v3887_v60  ;;  %v3905_v60 = vld [vmem:[#allocation7 + $0x178] sm:$0xff]  }
  0x93   : > { %3458 = vmatprep.subr.bf16.mxu0 %v4145_v0 }
  0x94   : > { %3399 = vmatpush3.bf16.msra.mxu1 %v3864_v39 }
  0x95   : > { %3400 = vmatprep.subr.bf16.mxu1 %v4145_v0 }
  0x96   : > { %3459 = vmatpush3.bf16.msra.mxu0 %v3889_v62 }
  0x97   : > { %3460 = vmatprep.subr.bf16.mxu0 %v4145_v0 }
  0x98   : > { %3401 = vmatpush3.bf16.msra.mxu1 %v3866_v40 }
  0x99   : > { %3402 = vmatprep.subr.bf16.mxu1 %v4145_v0 }
  0x9a   : > { %3461 = vmatpush3.bf16.msra.mxu0 %v3891_v1  ;;  %v3906_v1 = vld [vmem:[#allocation7 + $0x1c0] sm:$0xff]  }
  0x9b   : > { %3462 = vmatprep.subr.bf16.mxu0 %v4145_v0 }
  0x9c   : > { %3403 = vmatpush3.bf16.msra.mxu1 %v3868_v41 }
  0x9d   : > { %3404 = vmatprep.subr.bf16.mxu1 %v4145_v0 }
  0x9e   : > { %3463 = vmatpush3.bf16.msra.mxu0 %v3893_v3  ;;  %v3908_v3 = vld [vmem:[#allocation7 + $0x1c8] sm:$0xff]  }
  0x9f   : > { %3464 = vmatprep.subr.bf16.mxu0 %v4145_v0 }
  0xa0   : > { %3405 = vmatpush3.bf16.msra.mxu1 %v3870_v42 }
  0xa1   : > { %3406 = vmatprep.subr.bf16.mxu1 %v4145_v0 }
  0xa2   : > { %3465 = vmatpush3.bf16.msra.mxu0 %v3895_v5  ;;  %v3910_v5 = vld [vmem:[#allocation7 + $0x1d0] sm:$0xff]  }
  0xa3   : > { %3466 = vmatprep.subr.bf16.mxu0 %v4145_v0 }
  0xa4   : > { %3407 = vmatpush3.bf16.msra.mxu1 %v3872_v43 }
  0xa5   : > { %3432 = vmatprep.subr.bf16.mxu1 %v4145_v0 }
  0xa6   : > { %3467 = vmatpush3.bf16.msra.mxu0 %v3897_v7  ;;  %v3912_v7 = vld [vmem:[#allocation7 + $0x1d8] sm:$0xff]  }
  0xa7   : > { %3409 = vmatmul.mubr.bf16.vlgmr.msra.gmra.mrb[4].mxu1 %v528_v46  ;;  %3492 = vmatprep.subr.bf16.mxu0 %v4145_v0 }
  0xa8   : > { %3433 = vmatpush3.bf16.msra.mxu1 %v3874_v45  ;;  %3448 = vmatprep.mubr.msk.bf16.mxu1 %vm4146_vm0, %v4145_v0 }
  0xa9   : > { %3434 = vmatprep.subr.bf16.mxu1 %v4145_v0 }
  0xac   : > { %3435 = vmatpush3.bf16.msra.mxu1 %v3875_v47 }
  0xad   : > { %3436 = vmatprep.subr.bf16.mxu1 %v4145_v0 }
  0xb0   : > { %3437 = vmatpush3.bf16.msra.mxu1 %v3876_v48 }
  0xb1   : > { %3438 = vmatprep.subr.bf16.mxu1 %v4145_v0 }
  0xb4   : > { %3439 = vmatpush3.bf16.msra.mxu1 %v3877_v49  ;;  %v4423_v49 = vld [vmem:[#allocation2 + $0x8] sm:$0xff] }
  0xb5   : > { %3440 = vmatprep.subr.bf16.mxu1 %v4145_v0 }
  0xb8   : > { %3441 = vmatpush3.bf16.msra.mxu1 %v3878_v50 }
  0xb9   : > { %3442 = vmatprep.subr.bf16.mxu1 %v4145_v0 }
  0xbc   : > { %3443 = vmatpush3.bf16.msra.mxu1 %v3879_v51  ;;  %v3898_v51 = vld [vmem:[#allocation7 + $0x140] sm:$0xff]  }
  0xbd   : > { %3444 = vmatprep.subr.bf16.mxu1 %v4145_v0 }
  0xc0   : > { %3445 = vmatpush3.bf16.msra.mxu1 %v3880_v52 }
  0xc1   : > { %3446 = vmatprep.subr.bf16.mxu1 %v4145_v0 }
  0xc4   : > { %3447 = vmatpush3.bf16.msra.mxu1 %v3881_v53  ;;  %v3899_v53 = vld [vmem:[#allocation7 + $0x148] sm:$0xff]  }
  0xc5   : > { %3472 = vmatprep.subr.bf16.mxu1 %v4145_v0 }
  0xc7   : > { %3449 = vmatmul.mubr.bf16.vlgmr.msra.gmra.mrb[8].mxu1 %v717_v54  ;;  %v3900_v54 = vld [vmem:[#allocation7 + $0x150] sm:$0xff]  }
  0xc8   : > { %3488 = vmatprep.mubr.msk.bf16.mxu1 %vm4146_vm0, %v4145_v0  ;;  %3473 = vmatpush3.bf16.msra.mxu1 %v3882_v55  ;;  %v3901_v55 = vld [vmem:[#allocation7 + $0x158] sm:$0xff]  }
  0xc9   : > { %3474 = vmatprep.subr.bf16.mxu1 %v4145_v0 }
  0xcc   : > { %3475 = vmatpush3.bf16.msra.mxu1 %v3884_v57  ;;  %v3903_v57 = vld [vmem:[#allocation7 + $0x168] sm:$0xff]  }
  0xcd   : > { %3476 = vmatprep.subr.bf16.mxu1 %v4145_v0 }
  0xd0   : > { %3477 = vmatpush3.bf16.msra.mxu1 %v3886_v59 }
  0xd1   : > { %3478 = vmatprep.subr.bf16.mxu1 %v4145_v0 }
  0xd4   : > { %3479 = vmatpush3.bf16.msra.mxu1 %v3888_v61 }
  0xd5   : > { %3480 = vmatprep.subr.bf16.mxu1 %v4145_v0 }
  0xd8   : > { %3481 = vmatpush3.bf16.msra.mxu1 %v3890_v63 }
  0xd9   : > { %3482 = vmatprep.subr.bf16.mxu1 %v4145_v0 }
  0xdc   : > { %3483 = vmatpush3.bf16.msra.mxu1 %v3892_v2  ;;  %v3907_v2 = vld [vmem:[#allocation7 + $0x180] sm:$0xff]  }
  0xdd   : > { %3484 = vmatprep.subr.bf16.mxu1 %v4145_v0 }
  0xe0   : > { %3485 = vmatpush3.bf16.msra.mxu1 %v3894_v4  ;;  %v3909_v4 = vld [vmem:[#allocation7 + $0x188] sm:$0xff]  }
  0xe1   : > { %3486 = vmatprep.subr.bf16.mxu1 %v4145_v0 }
  0xe4   : > { %3487 = vmatpush3.bf16.msra.mxu1 %v3896_v6  ;;  %v3911_v6 = vld [vmem:[#allocation7 + $0x190] sm:$0xff]  }
  0xe5   : > { %3512 = vmatprep.subr.bf16.mxu1 %v4145_v0 }
 0x15a   : > { %v4417_v8 = vpop.f32.mrb[0].mxu1  ;;  %v704_v12 = vpop.f32.mrb[0].mxu0 }
 0x15b   : > { %v3390_v9 = vpop.f32.mrb[1].mxu1  ;;  %v3430_v13 = vpop.f32.mrb[1].mxu0 }
 0x15c   : > { %v458_v10 = vpop.f32.mrb[2].mxu1  ;;  %v707_v14 = vpop.f32.mrb[2].mxu0  ;;  %v3913_v9 = vld [vmem:[#allocation7 + $0x198] sm:$0xff]   ;;  %v3917_v13 = vld [vmem:[#allocation7 + $0x1a8] sm:$0xff]  }
 0x15d   : > { %v3391_v11 = vpop.f32.mrb[3].mxu1  ;;  %v3431_v15 = vpop.f32.mrb[3].mxu0  ;;  %v3914_v10 = vld [vmem:[#allocation7 + $0x1e0] sm:$0xff]  }
 0x15e   : > { %v3915_v11 = vld [vmem:[#allocation7 + $0x1a0] sm:$0xff]   ;;  %v3919_v15 = vld [vmem:[#allocation7 + $0x1b0] sm:$0xff]  }
 0x17a   : > { %v612_v16 = vpop.f32.mrb[4].mxu1 }
 0x17b   : > { %v705_v17 = vadd.f32 %v704_v12, %v612_v16  ;;  %v3410_v18 = vpop.f32.mrb[5].mxu1  ;;  %v3916_v12 = vld [vmem:[#allocation7 + $0x1e8] sm:$0xff]   ;;  %v3920_v16 = vld [vmem:[#allocation7 + $0x1f8] sm:$0xff]  }
 0x17c   : > { %v615_v19 = vpop.f32.mrb[6].mxu1 }
 0x17d   : > { %v708_v20 = vadd.f32 %v707_v14, %v615_v19  ;;  %v3411_v21 = vpop.f32.mrb[7].mxu1  ;;  %v3918_v14 = vld [vmem:[#allocation7 + $0x1f0] sm:$0xff]  }
 0x19a   : > { %v801_v0 = vpop.f32.mrb[8].mxu1 }
 0x19b   : > { %v808_v23 = vadd.f32 %v801_v0, %v705_v17  ;;  %v3450_v24 = vpop.f32.mrb[9].mxu1  ;;  %v3921_v17 = vld [vmem:[#allocation7 + $0x1b8] sm:$0xff]  }
 0x19c   : > { %v804_v25 = vpop.f32.mrb[10].mxu1 }
 0x19d   : > { %v816_v26 = vadd.f32 %v3054_v22, %v808_v23  ;;  %v809_v27 = vadd.f32 %v804_v25, %v708_v20  ;;  %v3451_v28 = vpop.f32.mrb[11].mxu1 }
 0x19e   : > { %v3080_v28 = vld [vmem:[%s4628_s2 + $0x1] ss:$0 sm:$0xff] }
 0x19f   : > { %v817_v29 = vadd.f32 %v3054_v22, %v809_v27  ;;  %v818_v30 = vmax.f32 %v816_v26, 0.0  ;;  %v3021_v27 = vld [vmem:[%s4630_s4] ss:$0 sm:$0xff] }
 0x1a1   : > { %v819_v31 = vmax.f32 %v817_v29, 0.0 }
 0x1a3   : > { %v820_v32 = vpack.c.bf16 %v819_v31, %v818_v30 }
 0x1a5   : > { %v822_v33 = vrot.slane %v820_v32, 4 }
 0x1a7   : > { %824 = vst [vmem:[#allocation4 + $0x8] ss:$-4 sps:$4 sm:$0xf1] %v822_v33   ;;  %v456_v33 = vadd.f32 %v3021_v27, %v4417_v8 }
 0x1ae   : > { %v879_v34 = vld [vmem:[#allocation4] sm:$0xf8]  ;;  %v880_v35 = vld [vmem:[#allocation4 + $0x8] sm:$0x1] }
 0x1af   : > { %v881_v36 = vld [vmem:[#allocation4 + $0x8] sm:$0x3]  ;;  %v992_v37 = vrot.slane %v879_v34, 3  ;;  %v993_v38 = vrot.slane %v880_v35, 3  ;;  %v883_v39 = vshrl.u32 %v879_v34, 16  ;;  %v886_v40 = vshll.u32 %v879_v34, 16 }
 0x1b0   : > { %v891_v41 = vshrl.u32 %v881_v36, 16  ;;  %v894_v42 = vshll.u32 %v881_v36, 16  ;;  %v1085_v59 = vld [vmem:[#allocation4] sm:$0xf0]  ;;  %v1089_v62 = vrot.slane %v881_v36, 4 }
 0x1b1   : > { %v994_v43 = vsel %vm991_vm4, %v992_v37, %v993_v38  ;;  %v885_v44 = vrot.slane %v883_v39, 3  ;;  %v888_v45 = vrot.slane %v886_v40, 4  ;;  %v1088_v61 = vrot.slane %v1085_v59, 4  ;;  %v1192_v37 = vld [vmem:[#allocation2 + $0x8] sm:$0xf] }
 0x1b2   : > { %3489 = vmatmul.mubr.bf16.vlgmr.msra.gmra.mrb[12].mxu1 %v994_v43  ;;  %v893_v46 = vrot.slane %v891_v41, 3  ;;  %v896_v47 = vrot.slane %v894_v42, 4  ;;  %v3926_v59 = vld [vmem:[#allocation7 + $0x220] sm:$0xff]  }
 0x1b3   : > { %v889_v48 = vor.u32 %v888_v45, %v885_v44  ;;  %3528 = vmatprep.mubr.msk.bf16.mxu1 %vm4146_vm0, %v4423_v49  ;;  %v1090_v63 = vsel %vm714_vm3, %v1088_v61, %v1089_v62  ;;  %3513 = vmatpush3.bf16.msra.mxu1 %v3906_v1  ;;  %v3928_v61 = vld [vmem:[#allocation7 + $0x230] sm:$0xff]   ;;  %v3929_v1 = vld [vmem:[#allocation7 + $0x238] sm:$0xff]  }
 0x1b4   : > { %v897_v50 = vor.u32 %v896_v47, %v893_v46  ;;  %3514 = vmatprep.subr.bf16.mxu1 %v4423_v49 }
 0x1b6   : > { %v898_v52 = vsel %vm515_vm2, %v889_v48, %v897_v50 }
 0x1b7   : > { %3469 = vmatmul.mubr.bf16.vlgmr.msra.gmra.mrb[4].mxu0 %v898_v52  ;;  %3515 = vmatpush3.bf16.msra.mxu1 %v3908_v3  ;;  %v3922_v52 = vld [vmem:[#allocation7 + $0x200] sm:$0xff]  }
 0x1b8   : > { %3493 = vmatpush3.bf16.msra.mxu0 %v3898_v51  ;;  %3508 = vmatprep.mubr.msk.bf16.mxu0 %vm4146_vm0, %v4423_v49 }
 0x1b9   : > { %3494 = vmatprep.subr.bf16.mxu0 %v4423_v49  ;;  %3516 = vmatprep.subr.bf16.mxu1 %v4423_v49 }
 0x1bb   : > { %3517 = vmatpush3.bf16.msra.mxu1 %v3910_v5  ;;  %v3930_v5 = vld [vmem:[#allocation7 + $0x280] sm:$0xff]  }
 0x1bc   : > { %3495 = vmatpush3.bf16.msra.mxu0 %v3899_v53  ;;  %3518 = vmatprep.subr.bf16.mxu1 %v4423_v49 }
 0x1bd   : > { %3496 = vmatprep.subr.bf16.mxu0 %v4423_v49 }
 0x1bf   : > { %3519 = vmatpush3.bf16.msra.mxu1 %v3912_v7  ;;  %v3932_v7 = vld [vmem:[#allocation7 + $0x288] sm:$0xff]  }
 0x1c0   : > { %3497 = vmatpush3.bf16.msra.mxu0 %v3900_v54  ;;  %3520 = vmatprep.subr.bf16.mxu1 %v4423_v49 }
 0x1c1   : > { %3498 = vmatprep.subr.bf16.mxu0 %v4423_v49 }
 0x1c3   : > { %3521 = vmatpush3.bf16.msra.mxu1 %v3914_v10  ;;  %v3934_v10 = vld [vmem:[#allocation7 + $0x290] sm:$0xff]  }
 0x1c4   : > { %3499 = vmatpush3.bf16.msra.mxu0 %v3901_v55  ;;  %3522 = vmatprep.subr.bf16.mxu1 %v4423_v49 }
 0x1c5   : > { %3500 = vmatprep.subr.bf16.mxu0 %v4423_v49 }
 0x1c7   : > { %3523 = vmatpush3.bf16.msra.mxu1 %v3916_v12  ;;  %v3936_v12 = vld [vmem:[#allocation7 + $0x298] sm:$0xff]  }
 0x1c8   : > { %3501 = vmatpush3.bf16.msra.mxu0 %v3902_v56  ;;  %3524 = vmatprep.subr.bf16.mxu1 %v4423_v49  ;;  %v3923_v56 = vld [vmem:[#allocation7 + $0x208] sm:$0xff]  }
 0x1c9   : > { %3502 = vmatprep.subr.bf16.mxu0 %v4423_v49 }
 0x1cb   : > { %3525 = vmatpush3.bf16.msra.mxu1 %v3918_v14  ;;  %v3938_v14 = vld [vmem:[#allocation7 + $0x2a0] sm:$0xff]  }
 0x1cc   : > { %3503 = vmatpush3.bf16.msra.mxu0 %v3903_v57  ;;  %3526 = vmatprep.subr.bf16.mxu1 %v4423_v49  ;;  %v3924_v57 = vld [vmem:[#allocation7 + $0x210] sm:$0xff]  }
 0x1cd   : > { %3504 = vmatprep.subr.bf16.mxu0 %v4423_v49 }
 0x1cf   : > { %3527 = vmatpush3.bf16.msra.mxu1 %v3920_v16  ;;  %v3940_v16 = vld [vmem:[#allocation7 + $0x2a8] sm:$0xff]  }
 0x1d0   : > { %3505 = vmatpush3.bf16.msra.mxu0 %v3904_v58  ;;  %3552 = vmatprep.subr.bf16.mxu1 %v4423_v49  ;;  %v3925_v58 = vld [vmem:[#allocation7 + $0x218] sm:$0xff]  }
 0x1d1   : > { %3506 = vmatprep.subr.bf16.mxu0 %v4423_v49 }
 0x1d4   : > { %3507 = vmatpush3.bf16.msra.mxu0 %v3905_v60  ;;  %v3927_v60 = vld [vmem:[#allocation7 + $0x228] sm:$0xff]  }
 0x1d5   : > { %3532 = vmatprep.subr.bf16.mxu0 %v4423_v49 }
 0x1d7   : > { %3509 = vmatmul.mubr.bf16.vlgmr.msra.gmra.mrb[8].mxu0 %v1090_v63 }
 0x1d8   : > { %3548 = vmatprep.mubr.msk.bf16.mxu0 %vm4146_vm0, %v4423_v49  ;;  %3533 = vmatpush3.bf16.msra.mxu0 %v3907_v2 }
 0x1d9   : > { %3534 = vmatprep.subr.bf16.mxu0 %v4423_v49 }
 0x1dc   : > { %3535 = vmatpush3.bf16.msra.mxu0 %v3909_v4 }
 0x1dd   : > { %3536 = vmatprep.subr.bf16.mxu0 %v4423_v49 }
 0x1e0   : > { %3537 = vmatpush3.bf16.msra.mxu0 %v3911_v6  ;;  %v3931_v6 = vld [vmem:[#allocation7 + $0x240] sm:$0xff]  }
 0x1e1   : > { %3538 = vmatprep.subr.bf16.mxu0 %v4423_v49 }
 0x1e4   : > { %3539 = vmatpush3.bf16.msra.mxu0 %v3913_v9  ;;  %v3933_v9 = vld [vmem:[#allocation7 + $0x248] sm:$0xff]  }
 0x1e5   : > { %3540 = vmatprep.subr.bf16.mxu0 %v4423_v49 }
 0x1e8   : > { %3541 = vmatpush3.bf16.msra.mxu0 %v3915_v11  ;;  %v3935_v11 = vld [vmem:[#allocation7 + $0x250] sm:$0xff]  }
 0x1e9   : > { %3542 = vmatprep.subr.bf16.mxu0 %v4423_v49 }
 0x1ec   : > { %3543 = vmatpush3.bf16.msra.mxu0 %v3917_v13  ;;  %v3937_v13 = vld [vmem:[#allocation7 + $0x258] sm:$0xff]  }
 0x1ed   : > { %3544 = vmatprep.subr.bf16.mxu0 %v4423_v49 }
 0x1f0   : > { %3545 = vmatpush3.bf16.msra.mxu0 %v3919_v15  ;;  %v3939_v15 = vld [vmem:[#allocation7 + $0x260] sm:$0xff]  }
 0x1f1   : > { %3546 = vmatprep.subr.bf16.mxu0 %v4423_v49 }
 0x1f4   : > { %3547 = vmatpush3.bf16.msra.mxu0 %v3921_v17  ;;  %v3941_v17 = vld [vmem:[#allocation7 + $0x268] sm:$0xff]  }
 0x1f5   : > { %3572 = vmatprep.subr.bf16.mxu0 %v3930_v5 }
 0x285   : > { %v1078_v18 = vpop.f32.mrb[12].mxu1 }
 0x286   : > { %v3490_v19 = vpop.f32.mrb[13].mxu1 }
 0x287   : > { %v1081_v20 = vpop.f32.mrb[14].mxu1  ;;  %v3943_v19 = vld [vmem:[#allocation7 + $0x270] sm:$0xff]  }
 0x288   : > { %v3491_v21 = vpop.f32.mrb[15].mxu1 }
 0x289   : > { %v3945_v21 = vld [vmem:[#allocation7 + $0x278] sm:$0xff]  }
 0x28a   : > { %v982_v22 = vpop.f32.mrb[4].mxu0 }
 0x28b   : > { %v1079_v0 = vadd.f32 %v1078_v18, %v982_v22  ;;  %v3470_v23 = vpop.f32.mrb[5].mxu0  ;;  %v3942_v18 = vld [vmem:[#allocation7 + $0x2b0] sm:$0xff]   ;;  %v3946_v22 = vld [vmem:[#allocation7 + $0x2c0] sm:$0xff]  }
 0x28c   : > { %v985_v24 = vpop.f32.mrb[6].mxu0 }
 0x28d   : > { %v1082_v25 = vadd.f32 %v1081_v20, %v985_v24  ;;  %v3471_v26 = vpop.f32.mrb[7].mxu0  ;;  %v3944_v20 = vld [vmem:[#allocation7 + $0x2b8] sm:$0xff]  }
 0x2aa   : > { %v1174_v29 = vpop.f32.mrb[8].mxu0 }
 0x2ab   : > { %v1181_v30 = vadd.f32 %v1174_v29, %v1079_v0  ;;  %v3510_v31 = vpop.f32.mrb[9].mxu0 }
 0x2ac   : > { %v1177_v32 = vpop.f32.mrb[10].mxu0 }
 0x2ad   : > { %v1189_v34 = vadd.f32 %v3080_v28, %v1181_v30  ;;  %v1182_v35 = vadd.f32 %v1177_v32, %v1082_v25  ;;  %v3511_v36 = vpop.f32.mrb[11].mxu0  ;;  %v3106_v32 = vld [vmem:[%s4628_s2 + $0x2] ss:$0 sm:$0xff] }
 0x2af   : > { %v4463_v38 = vadd.f32 %v1189_v34, %v456_v33  ;;  %v1190_v39 = vadd.f32 %v3080_v28, %v1182_v35 }
 0x2b1   : > { %v1194_v40 = vadd.f32 %v1192_v37, %v1190_v39  ;;  %v1195_v41 = vmax.f32 %v4463_v38, 0.0 }
 0x2b3   : > { %v1196_v42 = vmax.f32 %v1194_v40, 0.0 }
 0x2b5   : > { %1198 = vst [vmem:[#allocation2 + $0x8] sm:$0xf] %v1196_v42  ;;  %v1199_v43 = vpack.c.bf16 %v1196_v42, %v1195_v41 }
 0x2b7   : > { %v1201_v44 = vrot.slane %v1199_v43, 4 }
 0x2b9   : > { %1203 = vst [vmem:[#allocation3 + $0x8] ss:$-4 sps:$4 sm:$0xf3] %v1201_v44  }
 0x2c0   : > { %v1260_v45 = vld [vmem:[#allocation3] sm:$0xf8]  ;;  %v1261_v8 = vld [vmem:[#allocation3 + $0x8] sm:$0x7] }
 0x2c1   : > { %v1258_v46 = vld [vmem:[#allocation3] sm:$0xfc]  ;;  %v1264_v47 = vrot.slane %v1260_v45, 3  ;;  %v1265_v48 = vrot.slane %v1261_v8, 3  ;;  %v1259_v50 = vld [vmem:[#allocation3 + $0x8] sm:$0x3] }
 0x2c2   : > { %v1360_v51 = vrot.slane %v1258_v46, 2  ;;  %v1361_v53 = vrot.slane %v1259_v50, 2  ;;  %v1453_v62 = vld [vmem:[#allocation3] sm:$0xf0]  ;;  %v1454_v63 = vld [vmem:[#allocation3 + $0x8] sm:$0xf] }
 0x2c3   : > { %v1266_v54 = vsel %vm991_vm4, %v1264_v47, %v1265_v48  ;;  %v1457_v2 = vrot.slane %v1453_v62, 4  ;;  %v1458_v3 = vrot.slane %v1454_v63, 4  ;;  %v3948_v63 = vld [vmem:[#allocation7 + $0x2d0] sm:$0xff]  }
 0x2c4   : > { %3529 = vmatmul.mubr.bf16.vlgmr.msra.gmra.mrb[16].mxu1 %v1266_v54  ;;  %v1362_v55 = vsel %vm1359_vm5, %v1360_v51, %v1361_v53 }
 0x2c5   : > { %3549 = vmatmul.mubr.bf16.vlgmr.msra.gmra.mrb[12].mxu0 %v1362_v55  ;;  %3553 = vmatpush3.bf16.msra.mxu1 %v3922_v52  ;;  %v1459_v4 = vsel %vm714_vm3, %v1457_v2, %v1458_v3  ;;  %v3950_v2 = vld [vmem:[#allocation7 + $0x2e0] sm:$0xff]   ;;  %v3951_v3 = vld [vmem:[#allocation7 + $0x2e8] sm:$0xff]  }
 0x2c6   : > { %3554 = vmatprep.subr.bf16.mxu1 %v4423_v49  ;;  %3568 = vmatprep.mubr.msk.bf16.mxu1 %vm4146_vm0, %v4423_v49 }
 0x2c7   : > { %3573 = vmatpush3.bf16.msra.mxu0 %v3930_v5  ;;  %v3953_v5 = vld [vmem:[#allocation7 + $0x2f8] sm:$0xff]  }
 0x2c8   : > { %3574 = vmatprep.subr.bf16.mxu0 %v3932_v7 }
 0x2c9   : > { %3555 = vmatpush3.bf16.msra.mxu1 %v3923_v56 }
 0x2ca   : > { %3556 = vmatprep.subr.bf16.mxu1 %v4423_v49 }
 0x2cb   : > { %3575 = vmatpush3.bf16.msra.mxu0 %v3932_v7  ;;  %v3955_v7 = vld [vmem:[#allocation7 + $0x348] sm:$0xff]  }
 0x2cc   : > { %3576 = vmatprep.subr.bf16.mxu0 %v3934_v10 }
 0x2cd   : > { %3557 = vmatpush3.bf16.msra.mxu1 %v3924_v57 }
 0x2ce   : > { %3558 = vmatprep.subr.bf16.mxu1 %v4423_v49 }
 0x2cf   : > { %3577 = vmatpush3.bf16.msra.mxu0 %v3934_v10  ;;  %v3957_v10 = vld [vmem:[#allocation7 + $0x358] sm:$0xff]  }
 0x2d0   : > { %3578 = vmatprep.subr.bf16.mxu0 %v3936_v12 }
 0x2d1   : > { %3559 = vmatpush3.bf16.msra.mxu1 %v3925_v58 }
 0x2d2   : > { %3560 = vmatprep.subr.bf16.mxu1 %v4423_v49 }
 0x2d3   : > { %3579 = vmatpush3.bf16.msra.mxu0 %v3936_v12  ;;  %v3959_v12 = vld [vmem:[#allocation7 + $0x368] sm:$0xff]  }
 0x2d4   : > { %3580 = vmatprep.subr.bf16.mxu0 %v3938_v14 }
 0x2d5   : > { %3561 = vmatpush3.bf16.msra.mxu1 %v3926_v59 }
 0x2d6   : > { %3562 = vmatprep.subr.bf16.mxu1 %v4423_v49 }
 0x2d7   : > { %3581 = vmatpush3.bf16.msra.mxu0 %v3938_v14  ;;  %v3961_v14 = vld [vmem:[#allocation7 + $0x378] sm:$0xff]  }
 0x2d8   : > { %3582 = vmatprep.subr.bf16.mxu0 %v3940_v16 }
 0x2d9   : > { %3563 = vmatpush3.bf16.msra.mxu1 %v3927_v60  ;;  %v3947_v60 = vld [vmem:[#allocation7 + $0x2c8] sm:$0xff]  }
 0x2da   : > { %3564 = vmatprep.subr.bf16.mxu1 %v4423_v49 }
 0x2db   : > { %3583 = vmatpush3.bf16.msra.mxu0 %v3940_v16  ;;  %v3978_v16 = vld [vmem:[#allocation7 + $0x400] sm:$0xff]  }
 0x2dc   : > { %3584 = vmatprep.subr.bf16.mxu0 %v3942_v18 }
 0x2dd   : > { %3565 = vmatpush3.bf16.msra.mxu1 %v3928_v61 }
 0x2de   : > { %3566 = vmatprep.subr.bf16.mxu1 %v4423_v49 }
 0x2df   : > { %3585 = vmatpush3.bf16.msra.mxu0 %v3942_v18 }
 0x2e0   : > { %3586 = vmatprep.subr.bf16.mxu0 %v3944_v20 }
 0x2e1   : > { %3567 = vmatpush3.bf16.msra.mxu1 %v3929_v1  ;;  %v3949_v1 = vld [vmem:[#allocation7 + $0x2d8] sm:$0xff]  }
 0x2e2   : > { %3592 = vmatprep.subr.bf16.mxu1 %v3931_v6 }
 0x2e3   : > { %3587 = vmatpush3.bf16.msra.mxu0 %v3944_v20 }
 0x2e4   : > { %3569 = vmatmul.mubr.bf16.vlgmr.msra.gmra.mrb[20].mxu1 %v1459_v4  ;;  %3612 = vmatprep.subr.bf16.mxu0 %v3946_v22  ;;  %v3952_v4 = vld [vmem:[#allocation7 + $0x2f0] sm:$0xff]  }
 0x2e5   : > { %3593 = vmatpush3.bf16.msra.mxu1 %v3931_v6  ;;  %v3954_v6 = vld [vmem:[#allocation7 + $0x340] sm:$0xff]  }
 0x2e6   : > { %3594 = vmatprep.subr.bf16.mxu1 %v3933_v9 }
 0x2e9   : > { %3595 = vmatpush3.bf16.msra.mxu1 %v3933_v9  ;;  %v3956_v9 = vld [vmem:[#allocation7 + $0x350] sm:$0xff]  }
 0x2ea   : > { %3596 = vmatprep.subr.bf16.mxu1 %v3935_v11 }
 0x2ed   : > { %3597 = vmatpush3.bf16.msra.mxu1 %v3935_v11  ;;  %v3958_v11 = vld [vmem:[#allocation7 + $0x360] sm:$0xff]  }
 0x2ee   : > { %3598 = vmatprep.subr.bf16.mxu1 %v3937_v13 }
 0x2f1   : > { %3599 = vmatpush3.bf16.msra.mxu1 %v3937_v13  ;;  %v3960_v13 = vld [vmem:[#allocation7 + $0x370] sm:$0xff]  }
 0x2f2   : > { %3600 = vmatprep.subr.bf16.mxu1 %v3939_v15 }
 0x2f5   : > { %3601 = vmatpush3.bf16.msra.mxu1 %v3939_v15  ;;  %v3962_v15 = vld [vmem:[#allocation7 + $0x300] sm:$0xff]  }
 0x2f6   : > { %3602 = vmatprep.subr.bf16.mxu1 %v3941_v17 }
 0x2f9   : > { %3603 = vmatpush3.bf16.msra.mxu1 %v3941_v17  ;;  %v3979_v17 = vld [vmem:[#allocation7 + $0x408] sm:$0xff]  }
 0x2fa   : > { %3604 = vmatprep.subr.bf16.mxu1 %v3943_v19 }
 0x2fd   : > { %3605 = vmatpush3.bf16.msra.mxu1 %v3943_v19 }
 0x2fe   : > { %3606 = vmatprep.subr.bf16.mxu1 %v3945_v21 }
 0x301   : > { %3607 = vmatpush3.bf16.msra.mxu1 %v3945_v21 }
 0x302   : > { %3632 = vmatprep.subr.bf16.mxu1 %v3954_v6 }
 0x397   : > { %v1350_v0 = vpop.f32.mrb[16].mxu1 }
 0x398   : > { %v1446_v23 = vpop.f32.mrb[12].mxu0  ;;  %v3530_v24 = vpop.f32.mrb[17].mxu1 }
 0x399   : > { %v1447_v25 = vadd.f32 %v1446_v23, %v1350_v0  ;;  %v3550_v26 = vpop.f32.mrb[13].mxu0  ;;  %v1353_v27 = vpop.f32.mrb[18].mxu1 }
 0x39a   : > { %v1449_v28 = vpop.f32.mrb[14].mxu0  ;;  %v3531_v29 = vpop.f32.mrb[19].mxu1 }
 0x39b   : > { %v1450_v30 = vadd.f32 %v1449_v28, %v1353_v27  ;;  %v3551_v31 = vpop.f32.mrb[15].mxu0  ;;  %v3132_v28 = vld [vmem:[%s4628_s2 + $0x3] ss:$0 sm:$0xff] }
 0x3b7   : > { %v1543_v33 = vpop.f32.mrb[20].mxu1 }
 0x3b8   : > { %v1550_v34 = vadd.f32 %v1543_v33, %v1447_v25  ;;  %v3570_v35 = vpop.f32.mrb[21].mxu1 }
 0x3b9   : > { %v1546_v36 = vpop.f32.mrb[22].mxu1 }
 0x3ba   : > { %v1558_v37 = vadd.f32 %v3106_v32, %v1550_v34  ;;  %v1551_v39 = vadd.f32 %v1546_v36, %v1450_v30  ;;  %v3571_v40 = vpop.f32.mrb[23].mxu1 }
 0x3bc   : > { %v1559_v42 = vadd.f32 %v3106_v32, %v1551_v39  ;;  %v1560_v43 = vmax.f32 %v1558_v37, 0.0  ;;  %v1950_v32 = vld [vmem:[#allocation2 + $0x10] sm:$0xf] }
 0x3be   : > { %v1561_v44 = vmax.f32 %v1559_v42, 0.0 }
 0x3c0   : > { %v1562_v45 = vpack.c.bf16 %v1561_v44, %v1560_v43 }
 0x3c2   : > { %v1564_v8 = vrot.slane %v1562_v45, 4  ;;  %v1949_v45 = vld [vmem:[#allocation2 + $0x8] sm:$0xff] }
 0x3c4   : > { %1566 = vst [vmem:[#allocation4 + $0x8] ss:$-4 sps:$4 sm:$0xff] %v1564_v8  }
 0x3cb   : > { %v1623_v46 = vld [vmem:[#allocation4] sm:$0xf8]  ;;  %v1624_v47 = vld [vmem:[#allocation4 + $0x8] sm:$0x1f] }
 0x3cc   : > { %v1621_v48 = vld [vmem:[#allocation4] sm:$0xfc]  ;;  %v1627_v50 = vrot.slane %v1623_v46, 3  ;;  %v1628_v51 = vrot.slane %v1624_v47, 3  ;;  %v1622_v52 = vld [vmem:[#allocation4 + $0x8] sm:$0xf] }
 0x3cd   : > { %v1730_v53 = vrot.slane %v1621_v48, 2  ;;  %v1731_v54 = vrot.slane %v1622_v52, 2  ;;  %v1831_v55 = vld [vmem:[#allocation4] sm:$0xf0]  ;;  %v1832_v56 = vld [vmem:[#allocation4 + $0x8] sm:$0x3f] }
 0x3ce   : > { %v1629_v57 = vsel %vm991_vm4, %v1627_v50, %v1628_v51  ;;  %v1835_v58 = vrot.slane %v1831_v55, 4  ;;  %v1836_v59 = vrot.slane %v1832_v56, 4 }
 0x3cf   : > { %3588 = vmatprep.mubr.bf16.mxu0 %v1629_v57  ;;  %v1732_v61 = vsel %vm1359_vm5, %v1730_v53, %v1731_v54  ;;  %v3963_v57 = vld [vmem:[#allocation7 + $0x308] sm:$0xff]  }
 0x3d0   : > { %3608 = vmatprep.mubr.bf16.mxu1 %v1732_v61  ;;  %3589 = vmatmul.mubr.bf16.vlgmr.msra.gmra.mrb[16].mxu0 %v1628_v51  ;;  %v1837_v62 = vsel %vm714_vm3, %v1835_v58, %v1836_v59  ;;  %v3966_v61 = vld [vmem:[#allocation7 + $0x320] sm:$0xff]  }
 0x3d1   : > { %3609 = vmatmul.mubr.bf16.vlgmr.msra.gmra.mrb[24].mxu1 %v1731_v54  ;;  %3613 = vmatpush3.bf16.msra.mxu0 %v3946_v22 }
 0x3d2   : > { %3628 = vmatprep.mubr.bf16.mxu0 %v1837_v62  ;;  %3614 = vmatprep.subr.bf16.mxu0 %v3947_v60  ;;  %v3967_v62 = vld [vmem:[#allocation7 + $0x328] sm:$0xff]  }
 0x3d3   : > { %3633 = vmatpush3.bf16.msra.mxu1 %v3954_v6  ;;  %v3971_v6 = vld [vmem:[#allocation7 + $0x388] sm:$0xff]  }
 0x3d4   : > { %3634 = vmatprep.subr.bf16.mxu1 %v3955_v7 }
 0x3d5   : > { %3615 = vmatpush3.bf16.msra.mxu0 %v3947_v60  ;;  %v3965_v60 = vld [vmem:[#allocation7 + $0x318] sm:$0xff]  }
 0x3d6   : > { %3616 = vmatprep.subr.bf16.mxu0 %v3948_v63 }
 0x3d7   : > { %3635 = vmatpush3.bf16.msra.mxu1 %v3955_v7 }
 0x3d8   : > { %3636 = vmatprep.subr.bf16.mxu1 %v3956_v9 }
 0x3d9   : > { %3617 = vmatpush3.bf16.msra.mxu0 %v3948_v63  ;;  %v3968_v63 = vld [vmem:[#allocation7 + $0x330] sm:$0xff]  }
 0x3da   : > { %3618 = vmatprep.subr.bf16.mxu0 %v3949_v1 }
 0x3db   : > { %3637 = vmatpush3.bf16.msra.mxu1 %v3956_v9 }
 0x3dc   : > { %3638 = vmatprep.subr.bf16.mxu1 %v3957_v10 }
 0x3dd   : > { %3619 = vmatpush3.bf16.msra.mxu0 %v3949_v1  ;;  %v3969_v1 = vld [vmem:[#allocation7 + $0x338] sm:$0xff]  }
 0x3de   : > { %3620 = vmatprep.subr.bf16.mxu0 %v3950_v2 }
 0x3df   : > { %3639 = vmatpush3.bf16.msra.mxu1 %v3957_v10  ;;  %v3972_v10 = vld [vmem:[#allocation7 + $0x390] sm:$0xff]  }
 0x3e0   : > { %3640 = vmatprep.subr.bf16.mxu1 %v3958_v11 }
 0x3e1   : > { %3621 = vmatpush3.bf16.msra.mxu0 %v3950_v2 }
 0x3e2   : > { %3622 = vmatprep.subr.bf16.mxu0 %v3951_v3 }
 0x3e3   : > { %3641 = vmatpush3.bf16.msra.mxu1 %v3958_v11  ;;  %v3973_v11 = vld [vmem:[#allocation7 + $0x398] sm:$0xff]  }
 0x3e4   : > { %3642 = vmatprep.subr.bf16.mxu1 %v3959_v12 }
 0x3e5   : > { %3623 = vmatpush3.bf16.msra.mxu0 %v3951_v3  ;;  %v3970_v3 = vld [vmem:[#allocation7 + $0x380] sm:$0xff]  }
 0x3e6   : > { %3624 = vmatprep.subr.bf16.mxu0 %v3952_v4 }
 0x3e7   : > { %3643 = vmatpush3.bf16.msra.mxu1 %v3959_v12  ;;  %v3974_v12 = vld [vmem:[#allocation7 + $0x3a0] sm:$0xff]  }
 0x3e8   : > { %3644 = vmatprep.subr.bf16.mxu1 %v3960_v13 }
 0x3e9   : > { %3625 = vmatpush3.bf16.msra.mxu0 %v3952_v4 }
 0x3ea   : > { %3626 = vmatprep.subr.bf16.mxu0 %v3953_v5 }
 0x3eb   : > { %3645 = vmatpush3.bf16.msra.mxu1 %v3960_v13  ;;  %v3975_v13 = vld [vmem:[#allocation7 + $0x3a8] sm:$0xff]  }
 0x3ec   : > { %3646 = vmatprep.subr.bf16.mxu1 %v3961_v14 }
 0x3ed   : > { %3627 = vmatpush3.bf16.msra.mxu0 %v3953_v5 }
 0x3ee   : > { %3692 = vmatprep.subr.bf16.mxu0 %v4423_v49 }
 0x3ef   : > { %3647 = vmatpush3.bf16.msra.mxu1 %v3961_v14  ;;  %v3976_v14 = vld [vmem:[#allocation7 + $0x3b0] sm:$0xff]  }
 0x3f0   : > { %3629 = vmatmul.mubr.bf16.vlgmr.msra.gmra.mrb[20].mxu0 %v1836_v59  ;;  %3652 = vmatprep.subr.bf16.mxu1 %v3962_v15  ;;  %v3964_v59 = vld [vmem:[#allocation7 + $0x310] sm:$0xff]  }
 0x3f1   : > { %3708 = vmatprep.mubr.msk.bf16.mxu0 %vm4146_vm0, %v4423_v49  ;;  %3693 = vmatpush3.bf16.msra.mxu0 %v3978_v16  ;;  %v2231_v16 = vld [vmem:[#allocation3 + $0x10] sm:$0x3] }
 0x3f2   : > { %3694 = vmatprep.subr.bf16.mxu0 %v4423_v49 }
 0x3f5   : > { %3695 = vmatpush3.bf16.msra.mxu0 %v3979_v17  ;;  %v2238_v17 = vrot.slane %v2231_v16, 4 }
 0x3f6   : > { %3696 = vmatprep.subr.bf16.mxu0 %v4423_v49 }
 0x4a3   : > { %v3590_v18 = vpop.f32.mrb[16].mxu0 }
 0x4a4   : > { %v3610_v19 = vpop.f32.mrb[24].mxu1  ;;  %v1714_v20 = vpop.f32.mrb[17].mxu0 }
 0x4a5   : > { %v1826_v21 = vadd.f32 %v3610_v19, %v3590_v18  ;;  %v1817_v22 = vpop.f32.mrb[25].mxu1  ;;  %v3591_v0 = vpop.f32.mrb[18].mxu0  ;;  %v3980_v19 = vld [vmem:[#allocation7 + $0x410] sm:$0xff]  }
 0x4a6   : > { %v1818_v23 = vadd.f32 %v1817_v22, %v1714_v20  ;;  %v3611_v24 = vpop.f32.mrb[26].mxu1  ;;  %v1717_v25 = vpop.f32.mrb[19].mxu0  ;;  %3697 = vmatpush3.bf16.msra.mxu0 %v3980_v19  ;;  %v3981_v20 = vld [vmem:[#allocation7 + $0x418] sm:$0xff]   ;;  %v3983_v22 = vld [vmem:[#allocation7 + $0x428] sm:$0xff]   ;;  %v3984_v0 = vld [vmem:[#allocation7 + $0x430] sm:$0xff]  }
 0x4a7   : > { %v1820_v26 = vpop.f32.mrb[27].mxu1  ;;  %3698 = vmatprep.subr.bf16.mxu0 %v4423_v49  ;;  %v3158_v24 = vld [vmem:[%s4628_s2 + $0x4] ss:$0 sm:$0xff] }
 0x4a8   : > { %v1821_v27 = vadd.f32 %v1820_v26, %v1717_v25 }
 0x4aa   : > { %3699 = vmatpush3.bf16.msra.mxu0 %v3981_v20 }
 0x4ab   : > { %3700 = vmatprep.subr.bf16.mxu0 %v4423_v49 }
 0x4c3   : > { %v3630_v29 = vpop.f32.mrb[20].mxu0 }
 0x4c4   : > { %v1938_v30 = vadd.f32 %v3630_v29, %v1826_v21  ;;  %v1922_v31 = vpop.f32.mrb[21].mxu0  ;;  %v3982_v21 = vld [vmem:[#allocation7 + $0x420] sm:$0xff]  }
 0x4c5   : > { %v1936_v33 = vadd.f32 %v1922_v31, %v1818_v23  ;;  %v3631_v34 = vpop.f32.mrb[22].mxu0  ;;  %3701 = vmatpush3.bf16.msra.mxu0 %v3982_v21  ;;  %v3985_v23 = vld [vmem:[#allocation7 + $0x438] sm:$0xff]  }
 0x4c6   : > { %v1947_v35 = vadd.f32 %v3132_v28, %v1938_v30  ;;  %v1925_v36 = vpop.f32.mrb[23].mxu0  ;;  %3702 = vmatprep.subr.bf16.mxu0 %v4423_v49 }
 0x4c7   : > { %v1945_v37 = vadd.f32 %v3132_v28, %v1936_v33  ;;  %v1937_v39 = vadd.f32 %v1925_v36, %v1821_v27 }
 0x4c8   : > { %v1953_v40 = vadd.f32 %v1950_v32, %v1947_v35 }
 0x4c9   : > { %v4496_v42 = vadd.f32 %v1945_v37, %v1195_v41  ;;  %v1946_v43 = vadd.f32 %v3132_v28, %v1937_v39  ;;  %3703 = vmatpush3.bf16.msra.mxu0 %v3983_v22 }
 0x4ca   : > { %v1956_v44 = vmax.f32 %v1953_v40, 0.0  ;;  %3704 = vmatprep.subr.bf16.mxu0 %v4423_v49 }
 0x4cb   : > { %v4498_v8 = vadd.f32 %v1949_v45, %v1946_v43  ;;  %v1954_v47 = vmax.f32 %v4496_v42, 0.0 }
 0x4cc   : > { %1959 = vst [vmem:[#allocation2 + $0x10] sm:$0xf] %v1956_v44  ;;  %v1961_v46 = vpack.c.bf16 %v1956_v44, %v1956_v44 }
 0x4cd   : > { %v1955_v48 = vmax.f32 %v4498_v8, 0.0  ;;  %3705 = vmatpush3.bf16.msra.mxu0 %v3984_v0 }
 0x4ce   : > { %v1965_v51 = vrot.slane %v1961_v46, 4  ;;  %3706 = vmatprep.subr.bf16.mxu0 %v4423_v49 }
 0x4cf   : > { %v1960_v50 = vpack.c.bf16 %v1955_v48, %v1954_v47 }
 0x4d1   : > { %v1964_v38 = vrot.slane %v1960_v50, 4  ;;  %3707 = vmatpush3.bf16.msra.mxu0 %v3985_v23 }
 0x4d2   : > { %3720 = vmatprep.subr.bf16.mxu0 %v4423_v49 }
 0x4d3   : > { %v1966_v41 = vsel %vm714_vm3, %v1964_v38, %v1965_v51  ;;  %1969 = vst [vmem:[#allocation3] sm:$0xf0] %v1964_v38  ;;  %v3986_v51 = vld [vmem:[#allocation7 + $0x3c0] sm:$0xff]   ;;  %v2781_v8 = vld [vmem:[#allocation2 + $0x10] sm:$0xff] }
 0x4d4   : > { %1970 = vst [vmem:[#allocation3 + $0x8] sm:$0x3f] %v1966_v41 }
 0x4da   : > { %v2026_v52 = vld [vmem:[#allocation3] sm:$0xfc] }
 0x4db   : > { %v4507_v53 = vld [vmem:[#allocation3 + $0x8] sm:$0xff]  ;;  %v2030_v54 = vrot.slane %v2026_v52, 2  ;;  %v2024_v58 = vld [vmem:[#allocation3] sm:$0xff] }
 0x4dc   : > { %v2031_v55 = vrot.slane %v4507_v53, 2  ;;  %v2229_v2 = vld [vmem:[#allocation3] sm:$0xf0]  ;;  %v2236_v5 = vrot.slane %v4507_v53, 4  ;;  %v2025_v7 = vld [vmem:[#allocation3 + $0x8] sm:$0x3f] }
 0x4dd   : > { %v2235_v4 = vrot.slane %v2229_v2, 4  ;;  %v3987_v52 = vld [vmem:[#allocation7 + $0x3c8] sm:$0xff]   ;;  %v3997_v2 = vld [vmem:[#allocation7 + $0x458] sm:$0xff]  }
 0x4de   : > { %v2032_v56 = vsel %vm1359_vm5, %v2030_v54, %v2031_v55  ;;  %v2239_v18 = vsel %vm714_vm3, %v2236_v5, %v2238_v17  ;;  %v3988_v54 = vld [vmem:[#allocation7 + $0x3d0] sm:$0xff]  }
 0x4df   : > { %3648 = vmatprep.mubr.bf16.mxu1 %v2032_v56  ;;  %v2237_v9 = vsel %vm714_vm3, %v2235_v4, %v2236_v5  ;;  %v3989_v56 = vld [vmem:[#allocation7 + $0x3d8] sm:$0xff]   ;;  %v3999_v5 = vld [vmem:[#allocation7 + $0x468] sm:$0xff]  }
 0x4e0   : > { %3649 = vmatmul.mubr.bf16.vlgmr.msra.gmra.mrb[28].mxu1 %v2031_v55 }
 0x4e1   : > { %3653 = vmatpush3.bf16.msra.mxu1 %v3962_v15  ;;  %3668 = vmatprep.mubr.bf16.mxu1 %v2024_v58  ;;  %v3977_v15 = vld [vmem:[#allocation7 + $0x3b8] sm:$0xff]   ;;  %v3991_v58 = vld [vmem:[#allocation7 + $0x3e8] sm:$0xff]  }
 0x4e2   : > { %3654 = vmatprep.subr.bf16.mxu1 %v3963_v57 }
 0x4e5   : > { %3655 = vmatpush3.bf16.msra.mxu1 %v3963_v57  ;;  %v3990_v57 = vld [vmem:[#allocation7 + $0x3e0] sm:$0xff]  }
 0x4e6   : > { %3656 = vmatprep.subr.bf16.mxu1 %v3964_v59 }
 0x4e9   : > { %3657 = vmatpush3.bf16.msra.mxu1 %v3964_v59  ;;  %v3992_v59 = vld [vmem:[#allocation7 + $0x3f0] sm:$0xff]  }
 0x4ea   : > { %3658 = vmatprep.subr.bf16.mxu1 %v3965_v60 }
 0x4ed   : > { %3659 = vmatpush3.bf16.msra.mxu1 %v3965_v60  ;;  %v3993_v60 = vld [vmem:[#allocation7 + $0x3f8] sm:$0xff]  }
 0x4ee   : > { %3660 = vmatprep.subr.bf16.mxu1 %v3966_v61 }
 0x4f1   : > { %3661 = vmatpush3.bf16.msra.mxu1 %v3966_v61  ;;  %v3994_v61 = vld [vmem:[#allocation7 + $0x440] sm:$0xff]  }
 0x4f2   : > { %3662 = vmatprep.subr.bf16.mxu1 %v3967_v62 }
 0x4f5   : > { %3663 = vmatpush3.bf16.msra.mxu1 %v3967_v62 }
 0x4f6   : > { %3664 = vmatprep.subr.bf16.mxu1 %v3968_v63 }
 0x4f9   : > { %3665 = vmatpush3.bf16.msra.mxu1 %v3968_v63  ;;  %v3995_v63 = vld [vmem:[#allocation7 + $0x448] sm:$0xff]  }
 0x4fa   : > { %3666 = vmatprep.subr.bf16.mxu1 %v3969_v1 }
 0x4fd   : > { %3667 = vmatpush3.bf16.msra.mxu1 %v3969_v1  ;;  %v3996_v1 = vld [vmem:[#allocation7 + $0x450] sm:$0xff]  }
 0x4fe   : > { %3672 = vmatprep.subr.bf16.mxu1 %v3970_v3 }
 0x500   : > { %3669 = vmatmul.mubr.bf16.vlgmr.msra.gmra.mrb[28].mxu1 %v2025_v7  ;;  %v4556_v7 = vld [vmem:[#allocation2 + $0x20] sm:$0xff] }
 0x501   : > { %3673 = vmatpush3.bf16.msra.mxu1 %v3970_v3  ;;  %3688 = vmatprep.mubr.bf16.mxu1 %v2237_v9  ;;  %v3998_v3 = vld [vmem:[#allocation7 + $0x460] sm:$0xff]  }
 0x502   : > { %3674 = vmatprep.subr.bf16.mxu1 %v3971_v6 }
 0x505   : > { %3675 = vmatpush3.bf16.msra.mxu1 %v3971_v6  ;;  %v4000_v6 = vld [vmem:[#allocation7 + $0x470] sm:$0xff]  }
 0x506   : > { %3676 = vmatprep.subr.bf16.mxu1 %v3972_v10 }
 0x509   : > { %3677 = vmatpush3.bf16.msra.mxu1 %v3972_v10  ;;  %v4001_v10 = vld [vmem:[#allocation7 + $0x478] sm:$0xff]  }
 0x50a   : > { %3678 = vmatprep.subr.bf16.mxu1 %v3973_v11 }
 0x50d   : > { %3679 = vmatpush3.bf16.msra.mxu1 %v3973_v11 }
 0x50e   : > { %3680 = vmatprep.subr.bf16.mxu1 %v3974_v12 }
 0x511   : > { %3681 = vmatpush3.bf16.msra.mxu1 %v3974_v12 }
 0x512   : > { %3682 = vmatprep.subr.bf16.mxu1 %v3975_v13 }
 0x515   : > { %3683 = vmatpush3.bf16.msra.mxu1 %v3975_v13 }
 0x516   : > { %3684 = vmatprep.subr.bf16.mxu1 %v3976_v14 }
 0x519   : > { %3685 = vmatpush3.bf16.msra.mxu1 %v3976_v14 }
 0x51a   : > { %3686 = vmatprep.subr.bf16.mxu1 %v3977_v15 }
 0x51d   : > { %3687 = vmatpush3.bf16.msra.mxu1 %v3977_v15 }
 0x520   : > { %3689 = vmatmul.mubr.bf16.vlgmr.msra.gmra.mrb[28].mxu1 %v2239_v18 }
 0x5f3   : > { %v3690_v25 = vpop.f32.mrb[28].mxu1 }
 0x5f4   : > { %v2351_v26 = vadd.f32 %v3690_v25, %v3158_v24  ;;  %v2324_v27 = vpop.f32.mrb[29].mxu1 }
 0x5f5   : > { %v2349_v28 = vadd.f32 %v3158_v24, %v2324_v27  ;;  %v3691_v29 = vpop.f32.mrb[30].mxu1 }
 0x5f6   : > { %v2352_v30 = vadd.f32 %v3691_v29, %v3158_v24  ;;  %v2327_v31 = vpop.f32.mrb[31].mxu1  ;;  %v2355_v33 = vmax.f32 %v2351_v26, 0.0 }
 0x5f7   : > { %v2350_v32 = vadd.f32 %v3158_v24, %v2327_v31  ;;  %v2353_v35 = vmax.f32 %v2349_v28, 0.0 }
 0x5f8   : > { %v2356_v34 = vmax.f32 %v2352_v30, 0.0 }
 0x5f9   : > { %v2354_v36 = vmax.f32 %v2350_v32, 0.0 }
 0x5fa   : > { %v2358_v37 = vpack.c.bf16 %v2356_v34, %v2355_v33 }
 0x5fb   : > { %v2357_v39 = vpack.c.bf16 %v2354_v36, %v2353_v35 }
 0x5fc   : > { %v2362_v40 = vrot.slane %v2358_v37, 4 }
 0x5fd   : > { %v2361_v43 = vrot.slane %v2357_v39, 4 }
 0x5fe   : > { %2369 = vst [vmem:[#allocation4 + $0x10] sm:$0x3] %v2362_v40 }
 0x5ff   : > { %v4524_v44 = vsel %vm714_vm3, %v2361_v43, %v2362_v40  ;;  %2367 = vst [vmem:[#allocation4] sm:$0xf0] %v2361_v43 }
 0x600   : > { %2368 = vst [vmem:[#allocation4 + $0x8] sm:$0xff] %v4524_v44  ;;  %v2432_v50 = vrot.slane %v4524_v44, 2  ;;  %v2652_v12 = vrot.slane %v4524_v44, 4 }
 0x605   : > { %v2427_v41 = vld [vmem:[#allocation4 + $0x10] sm:$0xf] }
 0x606   : > { %v2426_v45 = vld [vmem:[#allocation4] sm:$0xfc]  ;;  %v2434_v53 = vrot.slane %v2427_v41, 2  ;;  %v2425_v4 = vld [vmem:[#allocation4 + $0x10] sm:$0x3] }
 0x607   : > { %v2431_v46 = vrot.slane %v2426_v45, 2  ;;  %v2423_v62 = vld [vmem:[#allocation4] sm:$0xff]  ;;  %v2648_v14 = vld [vmem:[#allocation4 + $0x10] sm:$0x3f] }
 0x608   : > { %v2435_v55 = vsel %vm1359_vm5, %v2432_v50, %v2434_v53  ;;  %v2647_v9 = vld [vmem:[#allocation4] sm:$0xf0] }
 0x609   : > { %v2433_v38 = vsel %vm1359_vm5, %v2431_v46, %v2432_v50  ;;  %v2651_v11 = vrot.slane %v2647_v9, 4  ;;  %v2816_v50 = vlaneseq }
 0x60a   : > { %3709 = vmatmul.mubr.bf16.vlgmr.msra.gmra.mrb[24].mxu0 %v2433_v38 }
 0x60b   : > { %3721 = vmatpush3.bf16.msra.mxu0 %v3986_v51  ;;  %3712 = vmatprep.mubr.msk.bf16.mxu0 %vm4146_vm0, %v4423_v49  ;;  %v2653_v13 = vsel %vm714_vm3, %v2651_v11, %v2652_v12  ;;  %v3184_v51 = vld [vmem:[%s4628_s2 + $0x5] ss:$0 sm:$0xff] }
 0x60c   : > { %3722 = vmatprep.subr.bf16.mxu0 %v4423_v49 }
 0x60f   : > { %3723 = vmatpush3.bf16.msra.mxu0 %v3987_v52 }
 0x610   : > { %3724 = vmatprep.subr.bf16.mxu0 %v4423_v49 }
 0x612   : > { %3713 = vmatmul.mubr.bf16.gmra.mrb[28].mxu0 %v2435_v55 }
 0x613   : > { %3725 = vmatpush3.bf16.msra.mxu0 %v3988_v54  ;;  %3716 = vmatprep.mubr.msk.bf16.mxu0 %vm4146_vm0, %v4423_v49  ;;  %v4570_v54 = vand.u32 127, %v2816_v50 }
 0x614   : > { %3726 = vmatprep.subr.bf16.mxu0 %v4423_v49 }
 0x615   : > { %vm2818_vm6 = vcmp.lt.s32.totalorder %v4570_v54, 16  ;;  %v3185_v54 = vld [vmem:[%s4631_s5] ss:$0 sm:$0xff] }
 0x617   : > { %3727 = vmatpush3.bf16.msra.mxu0 %v3989_v56 }
 0x618   : > { %3728 = vmatprep.subr.bf16.mxu0 %v4423_v49 }
 0x61a   : > { %3717 = vmatmul.mubr.bf16.gmra.mrb[32].mxu0 %v2434_v53 }
 0x61b   : > { %3729 = vmatpush3.bf16.msra.mxu0 %v3990_v57  ;;  %3736 = vmatprep.mubr.msk.bf16.mxu0 %vm4146_vm0, %v4423_v49 }
 0x61c   : > { %3730 = vmatprep.subr.bf16.mxu0 %v4423_v49 }
 0x61f   : > { %3731 = vmatpush3.bf16.msra.mxu0 %v3991_v58 }
 0x620   : > { %3732 = vmatprep.subr.bf16.mxu0 %v4423_v49 }
 0x623   : > { %3733 = vmatpush3.bf16.msra.mxu0 %v3992_v59 }
 0x624   : > { %3734 = vmatprep.subr.bf16.mxu0 %v4423_v49 }
 0x627   : > { %3735 = vmatpush3.bf16.msra.mxu0 %v3993_v60 }
 0x628   : > { %3748 = vmatprep.subr.bf16.mxu0 %v4423_v49 }
 0x62a   : > { %3737 = vmatmul.mubr.bf16.vlgmr.msra.gmra.mrb[36].mxu0 %v2423_v62 }
 0x62b   : > { %3749 = vmatpush3.bf16.msra.mxu0 %v3994_v61  ;;  %3740 = vmatprep.mubr.msk.bf16.mxu0 %vm4146_vm0, %v4423_v49 }
 0x62c   : > { %3750 = vmatprep.subr.bf16.mxu0 %v4423_v49 }
 0x62f   : > { %3751 = vmatpush3.bf16.msra.mxu0 %v3995_v63 }
 0x630   : > { %3752 = vmatprep.subr.bf16.mxu0 %v4423_v49 }
 0x632   : > { %3741 = vmatmul.mubr.bf16.gmra.mrb[40].mxu0 %v4524_v44 }
 0x633   : > { %3753 = vmatpush3.bf16.msra.mxu0 %v3996_v1  ;;  %3744 = vmatprep.mubr.msk.bf16.mxu0 %vm4146_vm0, %v4423_v49 }
 0x634   : > { %3754 = vmatprep.subr.bf16.mxu0 %v4423_v49 }
 0x637   : > { %3755 = vmatpush3.bf16.msra.mxu0 %v3997_v2 }
 0x638   : > { %3756 = vmatprep.subr.bf16.mxu0 %v4423_v49 }
 0x63a   : > { %3745 = vmatmul.mubr.bf16.gmra.mrb[44].mxu0 %v2425_v4 }
 0x63b   : > { %3757 = vmatpush3.bf16.msra.mxu0 %v3998_v3  ;;  %3764 = vmatprep.mubr.msk.bf16.mxu0 %vm4146_vm0, %v4423_v49 }
 0x63c   : > { %3758 = vmatprep.subr.bf16.mxu0 %v4423_v49  ;;  %v2654_v49 = vrot.slane %v2648_v14, 4 }
 0x63e   : > { %v2655_v15 = vsel %vm714_vm3, %v2652_v12, %v2654_v49 }
 0x63f   : > { %3759 = vmatpush3.bf16.msra.mxu0 %v3999_v5 }
 0x640   : > { %3760 = vmatprep.subr.bf16.mxu0 %v4556_v7 }
 0x643   : > { %3761 = vmatpush3.bf16.msra.mxu0 %v4000_v6 }
 0x644   : > { %3762 = vmatprep.subr.bf16.mxu0 %v4556_v7 }
 0x647   : > { %3763 = vmatpush3.bf16.msra.mxu0 %v4001_v10 }
 0x64a   : > { %3765 = vmatmul.mubr.bf16.vlgmr.msra.gmra.mrb[48].mxu0 %v2653_v13 }
 0x64b   : > { %3768 = vmatprep.mubr.msk.bf16.mxu0 %vm4146_vm0, %v4556_v7 }
 0x652   : > { %3769 = vmatmul.mubr.bf16.gmra.mrb[52].mxu0 %v2655_v15 }
 0x653   : > { %3772 = vmatprep.mubr.msk.bf16.mxu0 %vm4146_vm0, %v4556_v7 }
 0x65a   : > { %3773 = vmatmul.mubr.bf16.gmra.mrb[56].mxu0 %v2654_v49 }
 0x6dd   : > { %v2521_v16 = vpop.f32.mrb[24].mxu0 }
 0x6de   : > { %v3710_v17 = vpop.f32.mrb[25].mxu0 }
 0x6df   : > { %v2524_v18 = vpop.f32.mrb[26].mxu0 }
 0x6e0   : > { %v3711_v19 = vpop.f32.mrb[27].mxu0 }
 0x6e5   : > { %v2529_v20 = vpop.f32.mrb[28].mxu0 }
 0x6e6   : > { %v3714_v21 = vpop.f32.mrb[29].mxu0 }
 0x6e7   : > { %v2532_v22 = vpop.f32.mrb[30].mxu0 }
 0x6e8   : > { %v3715_v0 = vpop.f32.mrb[31].mxu0 }
 0x6ed   : > { %v2537_v23 = vpop.f32.mrb[32].mxu0 }
 0x6ee   : > { %v3718_v24 = vpop.f32.mrb[33].mxu0 }
 0x6ef   : > { %v2540_v25 = vpop.f32.mrb[34].mxu0 }
 0x6f0   : > { %v3719_v26 = vpop.f32.mrb[35].mxu0 }
 0x6fd   : > { %v2625_v27 = vpop.f32.mrb[36].mxu0 }
 0x6fe   : > { %v2626_v28 = vadd.f32 %v2625_v27, %v2521_v16  ;;  %v3738_v29 = vpop.f32.mrb[37].mxu0 }
 0x6ff   : > { %v2628_v30 = vpop.f32.mrb[38].mxu0 }
 0x700   : > { %v2629_v31 = vadd.f32 %v2628_v30, %v2524_v18  ;;  %v3739_v32 = vpop.f32.mrb[39].mxu0  ;;  %v2783_v18 = vld [vmem:[#allocation2 + $0x20] sm:$0xf] }
 0x705   : > { %v2633_v33 = vpop.f32.mrb[40].mxu0 }
 0x706   : > { %v2634_v34 = vadd.f32 %v2633_v33, %v2529_v20  ;;  %v3742_v35 = vpop.f32.mrb[41].mxu0 }
 0x707   : > { %v2636_v36 = vpop.f32.mrb[42].mxu0 }
 0x708   : > { %v2637_v37 = vadd.f32 %v2636_v36, %v2532_v22  ;;  %v3743_v39 = vpop.f32.mrb[43].mxu0 }
 0x70d   : > { %v2641_v40 = vpop.f32.mrb[44].mxu0 }
 0x70e   : > { %v2642_v43 = vadd.f32 %v2641_v40, %v2537_v23  ;;  %v3746_v44 = vpop.f32.mrb[45].mxu0 }
 0x70f   : > { %v2644_v45 = vpop.f32.mrb[46].mxu0 }
 0x710   : > { %v3747_v46 = vpop.f32.mrb[47].mxu0 }
 0x71d   : > { %v2741_v38 = vpop.f32.mrb[48].mxu0 }
 0x71e   : > { %v2763_v41 = vadd.f32 %v2741_v38, %v2626_v28  ;;  %v3766_v52 = vpop.f32.mrb[49].mxu0 }
 0x71f   : > { %v2744_v53 = vpop.f32.mrb[50].mxu0 }
 0x720   : > { %v2774_v55 = vadd.f32 %v3184_v51, %v2763_v41  ;;  %v2764_v56 = vadd.f32 %v2744_v53, %v2629_v31  ;;  %v3767_v57 = vpop.f32.mrb[51].mxu0 }
 0x722   : > { %v2784_v58 = vadd.f32 %v2774_v55, %v1954_v47  ;;  %v2775_v59 = vadd.f32 %v3184_v51, %v2764_v56 }
 0x724   : > { %v2789_v60 = vmax.f32 %v2784_v58, 0.0  ;;  %v2785_v61 = vadd.f32 %v2775_v59, %v1955_v48 }
 0x725   : > { %v2749_v62 = vpop.f32.mrb[52].mxu0 }
 0x726   : > { %2794 = vst [vmem:[#allocation2] sm:$0xff] %v2789_v60  ;;  %v2790_v63 = vmax.f32 %v2785_v61, 0.0  ;;  %v2765_v1 = vadd.f32 %v2749_v62, %v2634_v34  ;;  %v3770_v2 = vpop.f32.mrb[53].mxu0  ;;  %v2828_v3 = vsel %vm2818_vm6, %v2789_v60, 0.0 }
 0x727   : > { %v2752_v4 = vpop.f32.mrb[54].mxu0  ;;  %2833 = vadd.xlane.f32.xlu0 %v2828_v3 }
 0x728   : > { %2795 = vst [vmem:[#allocation2 + $0x8] sm:$0xff] %v2790_v63  ;;  %v2799_v42 = vpack.c.bf16 %v2790_v63, %v2789_v60  ;;  %v2776_v47 = vadd.f32 %v3184_v51, %v2765_v1  ;;  %v2766_v5 = vadd.f32 %v2752_v4, %v2637_v37  ;;  %v3771_v6 = vpop.f32.mrb[55].mxu0  ;;  %v2829_v9 = vsel %vm2818_vm6, %v2790_v63, 0.0 }
 0x729   : > { %2835 = vadd.xlane.f32.xlu1 %v2829_v9 }
 0x72a   : > { %v2805_v48 = vrot.slane %v2799_v42, 4  ;;  %v2786_v10 = vadd.f32 %v2781_v8, %v2776_v47  ;;  %v2777_v11 = vadd.f32 %v3184_v51, %v2766_v5 }
 0x72c   : > { %2813 = vst [vmem:[#allocation3] sm:$0xf0] %v2805_v48  ;;  %v2791_v12 = vmax.f32 %v2786_v10, 0.0  ;;  %v2787_v13 = vadd.f32 %v4556_v7, %v2777_v11  ;;  %v3186_v10 = vld [vmem:[%s4632_s6] ss:$0 sm:$0xff] }
 0x72d   : > { %v2757_v14 = vpop.f32.mrb[56].mxu0 }
 0x72e   : > { %2796 = vst [vmem:[#allocation2 + $0x10] sm:$0xff] %v2791_v12  ;;  %v2792_v49 = vmax.f32 %v2787_v13, 0.0  ;;  %v2767_v15 = vadd.f32 %v2757_v14, %v2642_v43  ;;  %v3774_v16 = vpop.f32.mrb[57].mxu0  ;;  %v2830_v17 = vsel %vm2818_vm6, %v2791_v12, 0.0 }
 0x72f   : > { %v2760_v19 = vpop.f32.mrb[58].mxu0  ;;  %2837 = vadd.xlane.f32.xlu1 %v2830_v17 }
 0x730   : > { %v2800_v20 = vpack.c.bf16 %v2792_v49, %v2791_v12  ;;  %v2778_v21 = vadd.f32 %v3184_v51, %v2767_v15  ;;  %v3775_v22 = vpop.f32.mrb[59].mxu0  ;;  %v2831_v31 = vsel %vm2818_vm6, %v2792_v49, 0.0 }
 0x732   : > { %v2806_v0 = vrot.slane %v2800_v20, 4  ;;  %v2788_v23 = vadd.f32 %v2783_v18, %v2778_v21 }
 0x734   : > { %v2807_v24 = vsel %vm714_vm3, %v2805_v48, %v2806_v0  ;;  %v2793_v25 = vmax.f32 %v2788_v23, 0.0 }
 0x735   : > { %2814 = vst [vmem:[#allocation3 + $0x8] sm:$0xff] %v2807_v24 }
 0x736   : > { %2798 = vst [vmem:[#allocation2 + $0x20] sm:$0xf] %v2793_v25  ;;  %v2801_v7 = vpack.c.bf16 %v2793_v25, %v2793_v25 }
 0x738   : > { %v2808_v26 = vrot.slane %v2801_v7, 4 }
 0x73a   : > { %v2809_v27 = vsel %vm714_vm3, %v2806_v0, %v2808_v26 }
 0x73b   : > { %2815 = vst [vmem:[#allocation3 + $0x10] sm:$0x3f] %v2809_v27 }
 0x73d   : > { %v2825_v28 = vld [vmem:[#allocation2 + $0x20] sm:$0xf] }
 0x73e   : > { %v2832_v29 = vsel %vm2818_vm6, %v2825_v28, 0.0 }
 0x73f   : > { %v2842_v30 = vsel %vm714_vm3, %v2832_v29, 0.0 }
 0x740   : > { %2843 = vadd.xlane.f32.xlu0 %v2842_v30 }
 0x744   : > { %2839 = vadd.xlane.f32.xlu0 %v2831_v31 }
 0x7b4   : > { %v2834_v32 = vpop.xlane.xlu0 %2833 }
 0x7b5   : > { %v2845_v33 = vmul.f32 0.0625, %v2834_v32 }
 0x7b6   : > { %v2836_v34 = vpop.xlane.xlu1 %2835 }
 0x7b7   : > { %v2850_v35 = vsub.f32 %v2789_v60, %v2845_v33  ;;  %v2846_v36 = vmul.f32 0.0625, %v2836_v34 }
 0x7b9   : > { %v2851_v37 = vsub.f32 %v2790_v63, %v2846_v36  ;;  %v2855_v39 = vsel %vm2818_vm6, %v2850_v35, 0.0 }
 0x7ba   : > { %v2860_v40 = vmul.f32 %v2855_v39, %v2855_v39 }
 0x7bb   : > { %v2856_v43 = vsel %vm2818_vm6, %v2851_v37, 0.0 }
 0x7bc   : > { %v2838_v44 = vpop.xlane.xlu1 %2837  ;;  %2865 = vadd.xlane.f32.xlu1 %v2860_v40  ;;  %v2861_v45 = vmul.f32 %v2856_v43, %v2856_v43 }
 0x7bd   : > { %v2847_v46 = vmul.f32 0.0625, %v2838_v44 }
 0x7be   : > { %2867 = vadd.xlane.f32.xlu0 %v2861_v45 }
 0x7bf   : > { %v2852_v50 = vsub.f32 %v2791_v12, %v2847_v46 }
 0x7c1   : > { %v2857_v51 = vsel %vm2818_vm6, %v2852_v50, 0.0 }
 0x7c2   : > { %v2862_v38 = vmul.f32 %v2857_v51, %v2857_v51 }
 0x7c4   : > { %2869 = vadd.xlane.f32.xlu1 %v2862_v38 }
 0x7cd   : > { %v2844_v41 = vpop.xlane.xlu0 %2843 }
 0x7ce   : > { %v2849_v52 = vmul.f32 0.0625, %v2844_v41 }
 0x7d0   : > { %v2854_v53 = vsub.f32 %v2825_v28, %v2849_v52 }
 0x7d1   : > { %v2840_v55 = vpop.xlane.xlu0 %2839 }
 0x7d2   : > { %v2848_v56 = vmul.f32 0.0625, %v2840_v55  ;;  %v2859_v57 = vsel %vm2818_vm6, %v2854_v53, 0.0 }
 0x7d3   : > { %v2864_v58 = vmul.f32 %v2859_v57, %v2859_v57 }
 0x7d4   : > { %v2853_v59 = vsub.f32 %v2792_v49, %v2848_v56 }
 0x7d5   : > { %v2873_v60 = vsel %vm714_vm3, %v2864_v58, 0.0 }
 0x7d6   : > { %2874 = vadd.xlane.f32.xlu1 %v2873_v60  ;;  %v2858_v61 = vsel %vm2818_vm6, %v2853_v59, 0.0 }
 0x7d7   : > { %v2863_v62 = vmul.f32 %v2858_v61, %v2858_v61 }
 0x7d9   : > { %2871 = vadd.xlane.f32.xlu0 %v2863_v62 }
 0x849   : > { %v2866_v63 = vpop.xlane.xlu1 %2865 }
 0x84a   : > { %v2876_v1 = vmul.f32 0.0625, %v2866_v63 }
 0x84b   : > { %v2868_v2 = vpop.xlane.xlu0 %2867 }
 0x84c   : > { %v2881_v3 = vadd.f32 1e-05, %v2876_v1  ;;  %v2877_v4 = vmul.f32 0.0625, %v2868_v2 }
 0x84e   : > { %4002 = vrsqrt.f32 %v2881_v3  ;;  %v2882_v42 = vadd.f32 1e-05, %v2877_v4 }
 0x850   : > { %4004 = vrsqrt.f32 %v2882_v42 }
 0x851   : > { %v2870_v47 = vpop.xlane.xlu1 %2869 }
 0x852   : > { %v2878_v5 = vmul.f32 0.0625, %v2870_v47 }
 0x854   : > { %v2883_v6 = vadd.f32 1e-05, %v2878_v5 }
 0x856   : > { %4006 = vrsqrt.f32 %v2883_v6 }
 0x858   : > { %v4003_v9 = vpop.eup %4002 }
 0x859   : > { %v2891_v8 = vmul.f32 %v4003_v9, %v2850_v35 }
 0x85a   : > { %v4005_v48 = vpop.eup %4004 }
 0x85b   : > { %v2902_v11 = vmul.f32 %v3185_v54, %v2891_v8  ;;  %v2892_v12 = vmul.f32 %v4005_v48, %v2851_v37 }
 0x85d   : > { %v2913_v13 = vadd.f32 %v3186_v10, %v2902_v11  ;;  %v2903_v14 = vmul.f32 %v3185_v54, %v2892_v12 }
 0x85f   : > { %2918 = vst [vmem:[%s324_s21] sm:$0xff] %v2913_v13  ;;  %v2914_v49 = vadd.f32 %v3186_v10, %v2903_v14 }
 0x860   : > { %v4007_v15 = vpop.eup %4006 }
 0x861   : > { %2919 = vst [vmem:[%s324_s21 + $0x8] sm:$0xff] %v2914_v49  ;;  %v2893_v16 = vmul.f32 %v4007_v15, %v2852_v50 }
 0x863   : > { %v2904_v17 = vmul.f32 %v3185_v54, %v2893_v16  ;;  %v2875_v18 = vpop.xlane.xlu1 %2874 }
 0x864   : > { %v2880_v19 = vmul.f32 0.0625, %v2875_v18 }
 0x865   : > { %v2915_v20 = vadd.f32 %v3186_v10, %v2904_v17 }
 0x866   : > { %v2885_v21 = vadd.f32 1e-05, %v2880_v19  ;;  %v2872_v22 = vpop.xlane.xlu0 %2871 }
 0x867   : > { %2920 = vst [vmem:[%s324_s21 + $0x10] sm:$0xff] %v2915_v20  ;;  %v2879_v0 = vmul.f32 0.0625, %v2872_v22 }
 0x868   : > { %4008 = vrsqrt.f32 %v2885_v21 }
 0x869   : > { %v2884_v23 = vadd.f32 1e-05, %v2879_v0 }
 0x86b   : > { %4010 = vrsqrt.f32 %v2884_v23 }
 0x872   : > { %v4009_v24 = vpop.eup %4008 }
 0x873   : > { %v2895_v25 = vmul.f32 %v4009_v24, %v2854_v53 }
 0x875   : > { %v4011_v7 = vpop.eup %4010  ;;  %v2906_v26 = vmul.f32 %v3185_v54, %v2895_v25 }
 0x876   : > { %v2894_v27 = vmul.f32 %v4011_v7, %v2853_v59 }
 0x877   : > { %v2917_v28 = vadd.f32 %v3186_v10, %v2906_v26 }
 0x878   : > { %v2905_v29 = vmul.f32 %v3185_v54, %v2894_v27 }
 0x879   : > { %2922 = vst [vmem:[%s324_s21 + $0x20] sm:$0xf] %v2917_v28 }
 0x87a   : > { %v2916_v30 = vadd.f32 %v3186_v10, %v2905_v29 }
 0x87c   : > { %2921 = vst [vmem:[%s324_s21 + $0x18] sm:$0xff] %v2916_v30 }
 0x87d PF: > { %p18_p9 = scmp.ge.s32.totalorder %s4281_s20, 4   ;;  %s4645_s24 = smov %s4130_s25 }
 0x87e   : > { %s4646_s25 = smov %s4134_s26  ;;  %s4647_s26 = smov %s4292_s8 }
 0x87f   : > { %s4648_s27 = smov %s4281_s20  ;;  %20 = sbr.rel (!%p18_p9) target bundleno = 4 (0x4), region = 118 }
 0x886   :  { %2944 = vsyncpa [#allocation6], 1 }
 0x887   :  { %2946 = vsyncpa [#allocation6 + $0x1], 1 }
 0x888   :  { %2947 = vsyncpa [#allocation8], 1 }

</bundles_post_ra>
